<compile_context>
chip_gen: v5e
topology: v5e:2x2
jax: 0.10.0
libtpu: 0.0.40
codegen_flags: <defaults>
</compile_context>

<pallas_src>
import jax
import jax.numpy as jnp
from jax import lax
from jax.experimental import pallas as pl
from jax.experimental.pallas import tpu as pltpu


def _flow_ratio_kernel(x_ref, cid_ref, sid_ref, ce_fc_ref, se_fc_ref,
                       lstm_w_ref, head_w_ref, out_ref):
    """Whole FlowRatioPredictor forward for one small batch.

    x_ref:      [T, B, F]       time-major market features
    cid_ref:    [B, 1] int32    client ids
    sid_ref:    [B, 1] int32    segment ids
    ce_fc_ref:  [C, M]          client_emb @ fc1_wc   (pre-fused)
    se_fc_ref:  [S, M]          segment_emb @ fc1_ws  (pre-fused)
    lstm_w_ref: [H+F+1, 4H]     rows [0:H]=W_hh, [H:H+F]=W_ih, [H+F]=bias
                                gate order [f, i, o, g]; g columns pre-scaled x2
    head_w_ref: [H+3, M]        rows [0:H]=fc1_wh, [H]=fc1_b, [H+1]=fc2_w,
                                [H+2,0]=fc2_b
    out_ref:    [B, 1]
    """
    T, B, F = x_ref.shape
    H = lstm_w_ref.shape[1] // 4
    C = ce_fc_ref.shape[0]
    S = se_fc_ref.shape[0]
    f32 = jnp.float32

    # ------------------------------------------------------------------
    # Dependency-free preamble: nothing here depends on h/c, so the LLO
    # scheduler overlaps it with the EUP/VPU stalls of the recurrence.
    # ------------------------------------------------------------------
    w_ih = lstm_w_ref[H:H + F]                 # [F, 4H]
    bias = lstm_w_ref[H + F:H + F + 1]         # [1, 4H]
    # Time-parallel input projection: 12 independent tiny MXU dots.
    xproj = [jnp.dot(x_ref[t], w_ih, preferred_element_type=f32) + bias
             for t in range(T)]

    # Embedding lookups as one-hot MXU matmuls against the fc1-fused tables.
    cid = cid_ref[...]                                                  # [B,1]
    sid = sid_ref[...]                                                  # [B,1]
    onehot_c = (lax.broadcasted_iota(jnp.int32, (B, C), 1) == cid).astype(f32)
    onehot_s = (lax.broadcasted_iota(jnp.int32, (B, S), 1) == sid).astype(f32)
    emb_fc1 = (jnp.dot(onehot_c, ce_fc_ref[...], preferred_element_type=f32)
               + jnp.dot(onehot_s, se_fc_ref[...], preferred_element_type=f32))

    # ------------------------------------------------------------------
    # Serial LSTM recurrence (the critical path).  Static-trip unrolled.
    # ------------------------------------------------------------------
    h = jnp.zeros((B, H), f32)
    c = jnp.zeros((B, H), f32)
    for t in range(T):
        # W_hh read from VMEM per step (cheap vld) instead of pinning 16 vregs
        # across the whole unrolled region; Mosaic keeps the constant RHS hot
        # on the MXU across steps.
        pre = xproj[t] + jnp.dot(h, lstm_w_ref[0:H],
                                 preferred_element_type=f32)            # [B,4H]
        # One unmasked sigmoid over all 4H columns; tanh(g) recovered on the
        # VPU since the g columns were pre-scaled by 2 at prepare time.
        s = jax.nn.sigmoid(pre)
        f_g = s[:, 0 * H:1 * H]
        i_g = s[:, 1 * H:2 * H]
        o_g = s[:, 2 * H:3 * H]
        g_g = 2.0 * s[:, 3 * H:4 * H] - 1.0      # == tanh(original g preact)
        c = f_g * c + i_g * g_g
        h = o_g * jnp.tanh(c)

    # ------------------------------------------------------------------
    # MLP head: fc1 (split, no concat) -> ReLU -> fc2 (VPU reduce) -> sigmoid
    # ------------------------------------------------------------------
    fc1_wh = head_w_ref[0:H]                    # [H, M]
    fc1_b = head_w_ref[H:H + 1]                 # [1, M]
    fc2_w = head_w_ref[H + 1:H + 2]             # [1, M]
    fc2_b = head_w_ref[H + 2:H + 3, 0:1]        # [1, 1]

    hidden = (jnp.dot(h, fc1_wh, preferred_element_type=f32) + emb_fc1 + fc1_b)
    hidden = jnp.maximum(hidden, 0.0)           # ReLU
    logits = jnp.sum(hidden * fc2_w, axis=-1, keepdims=True) + fc2_b    # [B,1]
    # [B,1] output is fine at B=8; for large B make it lane-dense ([1,B]).
    out_ref[...] = jax.nn.sigmoid(logits)


def init_params(key, client_id_size=500, segment_size=10, static_emb_dim=16,
                market_feature_dim=6, lstm_hidden_size=64, mlp_hidden_size=64):
    """Deterministic synthetic parameters (shapes/gate order match nn.Module)."""
    E, F, H, M = static_emb_dim, market_feature_dim, lstm_hidden_size, mlp_hidden_size
    ks = jax.random.split(key, 9)

    def rnd(k, shape, scale=0.1):
        return (scale * jax.random.normal(k, shape)).astype(jnp.float32)

    return dict(
        client_emb=rnd(ks[0], (client_id_size, E)),
        segment_emb=rnd(ks[1], (segment_size, E)),
        # LSTM weights, PyTorch gate order [i, f, g, o], stored as (in, 4H).
        # (Real PyTorch weights are [4H,in] and need a transpose; b = b_ih+b_hh.)
        w_ih=rnd(ks[2], (F, 4 * H)),
        w_hh=rnd(ks[3], (H, 4 * H)),
        b=rnd(ks[4], (1, 4 * H)),
        fc1_w=rnd(ks[5], (H + 2 * E, M)),
        fc1_b=rnd(ks[6], (1, M)),
        fc2_w=rnd(ks[7], (M, 1)),
        fc2_b=rnd(ks[8], (1, 1)),
    )


def prepare_params(params):
    """One-time parameter-side transforms (run once, NOT per call)."""
    H = params["w_hh"].shape[0]
    E = params["client_emb"].shape[1]
    M = params["fc1_b"].shape[1]

    def perm_scale(w):
        # [i, f, g, o] -> [f, i, o, g]; pre-scale g columns by 2 so the kernel
        # can use a sigmoid-only EUP path (tanh(x) = 2*sigmoid(2x) - 1).
        i = w[..., 0 * H:1 * H]
        f_ = w[..., 1 * H:2 * H]
        g = w[..., 2 * H:3 * H]
        o = w[..., 3 * H:4 * H]
        return jnp.concatenate([f_, i, o, 2.0 * g], axis=-1)

    w_hh_p = perm_scale(params["w_hh"]).astype(jnp.float32)            # [H, 4H]
    w_ih_p = perm_scale(params["w_ih"]).astype(jnp.float32)            # [F, 4H]
    b_p = perm_scale(params["b"]).astype(jnp.float32)                  # [1, 4H]
    lstm_w = jnp.concatenate([w_hh_p, w_ih_p, b_p], axis=0)            # [H+F+1,4H]

    fc1_w = params["fc1_w"].astype(jnp.float32)
    fc1_wh = fc1_w[:H]                                                 # [H, M]
    fc1_wc = fc1_w[H:H + E]                                            # [E, M]
    fc1_ws = fc1_w[H + E:]                                             # [E, M]
    # Fuse embedding tables with their fc1 blocks (no nonlinearity in between),
    # so the in-kernel one-hot gather lands directly in fc1 space.
    ce_fc = params["client_emb"].astype(jnp.float32) @ fc1_wc          # [C, M]
    se_fc = params["segment_emb"].astype(jnp.float32) @ fc1_ws         # [S, M]

    fc2_b_row = jnp.zeros((1, M), jnp.float32).at[0, 0].set(
        params["fc2_b"].reshape(())[()])
    head_w = jnp.concatenate(
        [fc1_wh,
         params["fc1_b"].astype(jnp.float32),
         params["fc2_w"].reshape(1, M).astype(jnp.float32),
         fc2_b_row], axis=0)                                           # [H+3, M]

    return dict(lstm_w=lstm_w, head_w=head_w, ce_fc=ce_fc, se_fc=se_fc)


def flow_ratio_predict(prepared, time_series_x, client_id, segment_id):
    """Per-call wrapper: layout plumbing only, then a single pallas_call."""
    B, T, F = time_series_x.shape
    x_tmajor = jnp.transpose(time_series_x, (1, 0, 2)).astype(jnp.float32)
    cid = client_id.astype(jnp.int32).reshape(B, 1)
    sid = segment_id.astype(jnp.int32).reshape(B, 1)

    vmem = lambda: pl.BlockSpec(memory_space=pltpu.MemorySpace.VMEM)
    out = pl.pallas_call(
        _flow_ratio_kernel,
        out_shape=jax.ShapeDtypeStruct((B, 1), jnp.float32),
        in_specs=[vmem() for _ in range(7)],
        out_specs=vmem(),
    )(x_tmajor, cid, sid,
      prepared["ce_fc"], prepared["se_fc"],
      prepared["lstm_w"], prepared["head_w"])
    return out[:, 0]                                                   # squeeze(-1)


def reference_forward(params, time_series_x, client_id, segment_id):
    """Pure-JAX reference mirroring the PyTorch forward (original gate order)."""
    B, T, _ = time_series_x.shape
    H = params["w_hh"].shape[0]
    h = jnp.zeros((B, H), jnp.float32)
    c = jnp.zeros((B, H), jnp.float32)
    for t in range(T):
        gates = (time_series_x[:, t, :] @ params["w_ih"]
                 + h @ params["w_hh"] + params["b"])
        i_g = jax.nn.sigmoid(gates[:, 0 * H:1 * H])
        f_g = jax.nn.sigmoid(gates[:, 1 * H:2 * H])
        g_g = jnp.tanh(gates[:, 2 * H:3 * H])
        o_g = jax.nn.sigmoid(gates[:, 3 * H:4 * H])
        c = f_g * c + i_g * g_g
        h = o_g * jnp.tanh(c)
    ce = params["client_emb"][client_id]
    se = params["segment_emb"][segment_id]
    combined = jnp.concatenate([h, ce, se], axis=1)
    hidden = jnp.maximum(combined @ params["fc1_w"] + params["fc1_b"], 0.0)
    return jax.nn.sigmoid(hidden @ params["fc2_w"] + params["fc2_b"])[:, 0]


if __name__ == "__main__":
    # Small shapes consistent with the module's forward.
    batch_size = 8
    time_steps = 12
    market_feature_dim = 6
    client_id_size = 500
    segment_size = 10

    key = jax.random.PRNGKey(0)
    k_params, k_x, k_cid, k_seg = jax.random.split(key, 4)

    params = init_params(k_params,
                         client_id_size=client_id_size,
                         segment_size=segment_size,
                         static_emb_dim=16,
                         market_feature_dim=market_feature_dim,
                         lstm_hidden_size=64,
                         mlp_hidden_size=64)
    prepared = prepare_params(params)        # parameter transforms done once

    time_series_x = jax.random.normal(
        k_x, (batch_size, time_steps, market_feature_dim), jnp.float32)
    client_id = jax.random.randint(k_cid, (batch_size,), 0, client_id_size)
    segment_id = jax.random.randint(k_seg, (batch_size,), 0, segment_size)

    predict = jax.jit(flow_ratio_predict)
    out = predict(prepared, time_series_x, client_id, segment_id)
    out = jax.block_until_ready(out)

    ref = reference_forward(params, time_series_x, client_id, segment_id)
    assert out.shape == (batch_size,)
    # Tiny slack over 1e-5 for the tanh(x) = 2*sigmoid(2x)-1 identity (~1e-6
    # per step, 12 steps) and matmul reassociation.
    assert jnp.allclose(out, ref, atol=5e-5, rtol=5e-5), (out, ref)

    print("KERNEL_OK")
</pallas_src>

<mosaic_0001>
module attributes {stable_mosaic.version = 11 : i64} {
  func.func @_flow_ratio_kernel(%arg0: memref<12x8x6xf32, #tpu.memory_space<vmem>>, %arg1: memref<8x1xi32, #tpu.memory_space<vmem>>, %arg2: memref<8x1xi32, #tpu.memory_space<vmem>>, %arg3: memref<500x64xf32, #tpu.memory_space<vmem>>, %arg4: memref<10x64xf32, #tpu.memory_space<vmem>>, %arg5: memref<71x256xf32, #tpu.memory_space<vmem>>, %arg6: memref<67x64xf32, #tpu.memory_space<vmem>>, %arg7: memref<8x1xf32, #tpu.memory_space<vmem>>) attributes {dimension_semantics = [], scalar_prefetch = 0 : i64, scratch_operands = 0 : i64, tpu.core_type = #tpu.core_type<tc>} {
    %c64 = arith.constant 64 : index
    %c0 = arith.constant 0 : index
    %0 = vector.load %arg5[%c64, %c0] : memref<71x256xf32, #tpu.memory_space<vmem>>, vector<6x256xf32>
    %c70 = arith.constant 70 : index
    %c0_0 = arith.constant 0 : index
    %1 = vector.load %arg5[%c70, %c0_0] : memref<71x256xf32, #tpu.memory_space<vmem>>, vector<1x256xf32>
    %c0_1 = arith.constant 0 : index
    %c0_2 = arith.constant 0 : index
    %c0_3 = arith.constant 0 : index
    %2 = vector.load %arg0[%c0_1, %c0_2, %c0_3] : memref<12x8x6xf32, #tpu.memory_space<vmem>>, vector<1x8x6xf32>
    %3 = vector.shape_cast %2 : vector<1x8x6xf32> to vector<8x6xf32>
    %cst = arith.constant dense<0.000000e+00> : vector<8x256xf32>
    %4 = tpu.matmul %3, %0, %cst {dimension_numbers = #tpu.dot_dimension_numbers<[1], [0], [0], [1], [0, 0, 1, 1], [], []>} : vector<8x6xf32>, vector<6x256xf32>, vector<8x256xf32> -> vector<8x256xf32>
    %5 = vector.broadcast %1 : vector<1x256xf32> to vector<8x256xf32>
    %6 = arith.addf %4, %5 : vector<8x256xf32>
    %c1 = arith.constant 1 : index
    %c0_4 = arith.constant 0 : index
    %c0_5 = arith.constant 0 : index
    %7 = vector.load %arg0[%c1, %c0_4, %c0_5] : memref<12x8x6xf32, #tpu.memory_space<vmem>>, vector<1x8x6xf32>
    %8 = vector.shape_cast %7 : vector<1x8x6xf32> to vector<8x6xf32>
    %cst_6 = arith.constant dense<0.000000e+00> : vector<8x256xf32>
    %9 = tpu.matmul %8, %0, %cst_6 {dimension_numbers = #tpu.dot_dimension_numbers<[1], [0], [0], [1], [0, 0, 1, 1], [], []>} : vector<8x6xf32>, vector<6x256xf32>, vector<8x256xf32> -> vector<8x256xf32>
    %10 = vector.broadcast %1 : vector<1x256xf32> to vector<8x256xf32>
    %11 = arith.addf %9, %10 : vector<8x256xf32>
    %c2 = arith.constant 2 : index
    %c0_7 = arith.constant 0 : index
    %c0_8 = arith.constant 0 : index
    %12 = vector.load %arg0[%c2, %c0_7, %c0_8] : memref<12x8x6xf32, #tpu.memory_space<vmem>>, vector<1x8x6xf32>
    %13 = vector.shape_cast %12 : vector<1x8x6xf32> to vector<8x6xf32>
    %cst_9 = arith.constant dense<0.000000e+00> : vector<8x256xf32>
    %14 = tpu.matmul %13, %0, %cst_9 {dimension_numbers = #tpu.dot_dimension_numbers<[1], [0], [0], [1], [0, 0, 1, 1], [], []>} : vector<8x6xf32>, vector<6x256xf32>, vector<8x256xf32> -> vector<8x256xf32>
    %15 = vector.broadcast %1 : vector<1x256xf32> to vector<8x256xf32>
    %16 = arith.addf %14, %15 : vector<8x256xf32>
    %c3 = arith.constant 3 : index
    %c0_10 = arith.constant 0 : index
    %c0_11 = arith.constant 0 : index
    %17 = vector.load %arg0[%c3, %c0_10, %c0_11] : memref<12x8x6xf32, #tpu.memory_space<vmem>>, vector<1x8x6xf32>
    %18 = vector.shape_cast %17 : vector<1x8x6xf32> to vector<8x6xf32>
    %cst_12 = arith.constant dense<0.000000e+00> : vector<8x256xf32>
    %19 = tpu.matmul %18, %0, %cst_12 {dimension_numbers = #tpu.dot_dimension_numbers<[1], [0], [0], [1], [0, 0, 1, 1], [], []>} : vector<8x6xf32>, vector<6x256xf32>, vector<8x256xf32> -> vector<8x256xf32>
    %20 = vector.broadcast %1 : vector<1x256xf32> to vector<8x256xf32>
    %21 = arith.addf %19, %20 : vector<8x256xf32>
    %c4 = arith.constant 4 : index
    %c0_13 = arith.constant 0 : index
    %c0_14 = arith.constant 0 : index
    %22 = vector.load %arg0[%c4, %c0_13, %c0_14] : memref<12x8x6xf32, #tpu.memory_space<vmem>>, vector<1x8x6xf32>
    %23 = vector.shape_cast %22 : vector<1x8x6xf32> to vector<8x6xf32>
    %cst_15 = arith.constant dense<0.000000e+00> : vector<8x256xf32>
    %24 = tpu.matmul %23, %0, %cst_15 {dimension_numbers = #tpu.dot_dimension_numbers<[1], [0], [0], [1], [0, 0, 1, 1], [], []>} : vector<8x6xf32>, vector<6x256xf32>, vector<8x256xf32> -> vector<8x256xf32>
    %25 = vector.broadcast %1 : vector<1x256xf32> to vector<8x256xf32>
    %26 = arith.addf %24, %25 : vector<8x256xf32>
    %c5 = arith.constant 5 : index
    %c0_16 = arith.constant 0 : index
    %c0_17 = arith.constant 0 : index
    %27 = vector.load %arg0[%c5, %c0_16, %c0_17] : memref<12x8x6xf32, #tpu.memory_space<vmem>>, vector<1x8x6xf32>
    %28 = vector.shape_cast %27 : vector<1x8x6xf32> to vector<8x6xf32>
    %cst_18 = arith.constant dense<0.000000e+00> : vector<8x256xf32>
    %29 = tpu.matmul %28, %0, %cst_18 {dimension_numbers = #tpu.dot_dimension_numbers<[1], [0], [0], [1], [0, 0, 1, 1], [], []>} : vector<8x6xf32>, vector<6x256xf32>, vector<8x256xf32> -> vector<8x256xf32>
    %30 = vector.broadcast %1 : vector<1x256xf32> to vector<8x256xf32>
    %31 = arith.addf %29, %30 : vector<8x256xf32>
    %c6 = arith.constant 6 : index
    %c0_19 = arith.constant 0 : index
    %c0_20 = arith.constant 0 : index
    %32 = vector.load %arg0[%c6, %c0_19, %c0_20] : memref<12x8x6xf32, #tpu.memory_space<vmem>>, vector<1x8x6xf32>
    %33 = vector.shape_cast %32 : vector<1x8x6xf32> to vector<8x6xf32>
    %cst_21 = arith.constant dense<0.000000e+00> : vector<8x256xf32>
    %34 = tpu.matmul %33, %0, %cst_21 {dimension_numbers = #tpu.dot_dimension_numbers<[1], [0], [0], [1], [0, 0, 1, 1], [], []>} : vector<8x6xf32>, vector<6x256xf32>, vector<8x256xf32> -> vector<8x256xf32>
    %35 = vector.broadcast %1 : vector<1x256xf32> to vector<8x256xf32>
    %36 = arith.addf %34, %35 : vector<8x256xf32>
    %c7 = arith.constant 7 : index
    %c0_22 = arith.constant 0 : index
    %c0_23 = arith.constant 0 : index
    %37 = vector.load %arg0[%c7, %c0_22, %c0_23] : memref<12x8x6xf32, #tpu.memory_space<vmem>>, vector<1x8x6xf32>
    %38 = vector.shape_cast %37 : vector<1x8x6xf32> to vector<8x6xf32>
    %cst_24 = arith.constant dense<0.000000e+00> : vector<8x256xf32>
    %39 = tpu.matmul %38, %0, %cst_24 {dimension_numbers = #tpu.dot_dimension_numbers<[1], [0], [0], [1], [0, 0, 1, 1], [], []>} : vector<8x6xf32>, vector<6x256xf32>, vector<8x256xf32> -> vector<8x256xf32>
    %40 = vector.broadcast %1 : vector<1x256xf32> to vector<8x256xf32>
    %41 = arith.addf %39, %40 : vector<8x256xf32>
    %c8 = arith.constant 8 : index
    %c0_25 = arith.constant 0 : index
    %c0_26 = arith.constant 0 : index
    %42 = vector.load %arg0[%c8, %c0_25, %c0_26] : memref<12x8x6xf32, #tpu.memory_space<vmem>>, vector<1x8x6xf32>
    %43 = vector.shape_cast %42 : vector<1x8x6xf32> to vector<8x6xf32>
    %cst_27 = arith.constant dense<0.000000e+00> : vector<8x256xf32>
    %44 = tpu.matmul %43, %0, %cst_27 {dimension_numbers = #tpu.dot_dimension_numbers<[1], [0], [0], [1], [0, 0, 1, 1], [], []>} : vector<8x6xf32>, vector<6x256xf32>, vector<8x256xf32> -> vector<8x256xf32>
    %45 = vector.broadcast %1 : vector<1x256xf32> to vector<8x256xf32>
    %46 = arith.addf %44, %45 : vector<8x256xf32>
    %c9 = arith.constant 9 : index
    %c0_28 = arith.constant 0 : index
    %c0_29 = arith.constant 0 : index
    %47 = vector.load %arg0[%c9, %c0_28, %c0_29] : memref<12x8x6xf32, #tpu.memory_space<vmem>>, vector<1x8x6xf32>
    %48 = vector.shape_cast %47 : vector<1x8x6xf32> to vector<8x6xf32>
    %cst_30 = arith.constant dense<0.000000e+00> : vector<8x256xf32>
    %49 = tpu.matmul %48, %0, %cst_30 {dimension_numbers = #tpu.dot_dimension_numbers<[1], [0], [0], [1], [0, 0, 1, 1], [], []>} : vector<8x6xf32>, vector<6x256xf32>, vector<8x256xf32> -> vector<8x256xf32>
    %50 = vector.broadcast %1 : vector<1x256xf32> to vector<8x256xf32>
    %51 = arith.addf %49, %50 : vector<8x256xf32>
    %c10 = arith.constant 10 : index
    %c0_31 = arith.constant 0 : index
    %c0_32 = arith.constant 0 : index
    %52 = vector.load %arg0[%c10, %c0_31, %c0_32] : memref<12x8x6xf32, #tpu.memory_space<vmem>>, vector<1x8x6xf32>
    %53 = vector.shape_cast %52 : vector<1x8x6xf32> to vector<8x6xf32>
    %cst_33 = arith.constant dense<0.000000e+00> : vector<8x256xf32>
    %54 = tpu.matmul %53, %0, %cst_33 {dimension_numbers = #tpu.dot_dimension_numbers<[1], [0], [0], [1], [0, 0, 1, 1], [], []>} : vector<8x6xf32>, vector<6x256xf32>, vector<8x256xf32> -> vector<8x256xf32>
    %55 = vector.broadcast %1 : vector<1x256xf32> to vector<8x256xf32>
    %56 = arith.addf %54, %55 : vector<8x256xf32>
    %c11 = arith.constant 11 : index
    %c0_34 = arith.constant 0 : index
    %c0_35 = arith.constant 0 : index
    %57 = vector.load %arg0[%c11, %c0_34, %c0_35] : memref<12x8x6xf32, #tpu.memory_space<vmem>>, vector<1x8x6xf32>
    %58 = vector.shape_cast %57 : vector<1x8x6xf32> to vector<8x6xf32>
    %cst_36 = arith.constant dense<0.000000e+00> : vector<8x256xf32>
    %59 = tpu.matmul %58, %0, %cst_36 {dimension_numbers = #tpu.dot_dimension_numbers<[1], [0], [0], [1], [0, 0, 1, 1], [], []>} : vector<8x6xf32>, vector<6x256xf32>, vector<8x256xf32> -> vector<8x256xf32>
    %60 = vector.broadcast %1 : vector<1x256xf32> to vector<8x256xf32>
    %61 = arith.addf %59, %60 : vector<8x256xf32>
    %c0_37 = arith.constant 0 : index
    %c0_38 = arith.constant 0 : index
    %62 = vector.load %arg1[%c0_37, %c0_38] : memref<8x1xi32, #tpu.memory_space<vmem>>, vector<8x1xi32>
    %c0_39 = arith.constant 0 : index
    %c0_40 = arith.constant 0 : index
    %63 = vector.load %arg2[%c0_39, %c0_40] : memref<8x1xi32, #tpu.memory_space<vmem>>, vector<8x1xi32>
    %64 = tpu.iota {dimensions = array<i32: 1>} : vector<8x500xi32>
    %65 = vector.broadcast %62 : vector<8x1xi32> to vector<8x500xi32>
    %66 = arith.cmpi eq, %64, %65 : vector<8x500xi32>
    %67 = arith.extui %66 : vector<8x500xi1> to vector<8x500xi32>
    %68 = arith.sitofp %67 : vector<8x500xi32> to vector<8x500xf32>
    %69 = tpu.iota {dimensions = array<i32: 1>} : vector<8x10xi32>
    %70 = vector.broadcast %63 : vector<8x1xi32> to vector<8x10xi32>
    %71 = arith.cmpi eq, %69, %70 : vector<8x10xi32>
    %72 = arith.extui %71 : vector<8x10xi1> to vector<8x10xi32>
    %73 = arith.sitofp %72 : vector<8x10xi32> to vector<8x10xf32>
    %c0_41 = arith.constant 0 : index
    %c0_42 = arith.constant 0 : index
    %74 = vector.load %arg3[%c0_41, %c0_42] : memref<500x64xf32, #tpu.memory_space<vmem>>, vector<500x64xf32>
    %cst_43 = arith.constant dense<0.000000e+00> : vector<8x64xf32>
    %75 = tpu.matmul %68, %74, %cst_43 {dimension_numbers = #tpu.dot_dimension_numbers<[1], [0], [0], [1], [0, 0, 1, 1], [], []>} : vector<8x500xf32>, vector<500x64xf32>, vector<8x64xf32> -> vector<8x64xf32>
    %c0_44 = arith.constant 0 : index
    %c0_45 = arith.constant 0 : index
    %76 = vector.load %arg4[%c0_44, %c0_45] : memref<10x64xf32, #tpu.memory_space<vmem>>, vector<10x64xf32>
    %cst_46 = arith.constant dense<0.000000e+00> : vector<8x64xf32>
    %77 = tpu.matmul %73, %76, %cst_46 {dimension_numbers = #tpu.dot_dimension_numbers<[1], [0], [0], [1], [0, 0, 1, 1], [], []>} : vector<8x10xf32>, vector<10x64xf32>, vector<8x64xf32> -> vector<8x64xf32>
    %78 = arith.addf %75, %77 : vector<8x64xf32>
    %cst_47 = arith.constant 0.000000e+00 : f32
    %79 = vector.broadcast %cst_47 : f32 to vector<8x64xf32>
    %cst_48 = arith.constant 0.000000e+00 : f32
    %80 = vector.broadcast %cst_48 : f32 to vector<8x64xf32>
    %c0_49 = arith.constant 0 : index
    %c0_50 = arith.constant 0 : index
    %81 = vector.load %arg5[%c0_49, %c0_50] : memref<71x256xf32, #tpu.memory_space<vmem>>, vector<64x256xf32>
    %cst_51 = arith.constant dense<0.000000e+00> : vector<8x256xf32>
    %82 = tpu.matmul %79, %81, %cst_51 {dimension_numbers = #tpu.dot_dimension_numbers<[1], [0], [0], [1], [0, 0, 1, 1], [], []>} : vector<8x64xf32>, vector<64x256xf32>, vector<8x256xf32> -> vector<8x256xf32>
    %83 = arith.addf %6, %82 : vector<8x256xf32>
    %84 = arith.negf %83 : vector<8x256xf32>
    %85 = math.exp %84 : vector<8x256xf32>
    %cst_52 = arith.constant 1.000000e+00 : f32
    %86 = vector.broadcast %cst_52 : f32 to vector<8x256xf32>
    %87 = arith.addf %86, %85 : vector<8x256xf32>
    %88 = arith.divf %86, %87 : vector<8x256xf32>
    %89 = vector.extract_strided_slice %88 {offsets = [0, 0], sizes = [8, 64], strides = [1, 1]} : vector<8x256xf32> to vector<8x64xf32>
    %90 = vector.extract_strided_slice %88 {offsets = [0, 64], sizes = [8, 64], strides = [1, 1]} : vector<8x256xf32> to vector<8x64xf32>
    %91 = vector.extract_strided_slice %88 {offsets = [0, 128], sizes = [8, 64], strides = [1, 1]} : vector<8x256xf32> to vector<8x64xf32>
    %92 = vector.extract_strided_slice %88 {offsets = [0, 192], sizes = [8, 64], strides = [1, 1]} : vector<8x256xf32> to vector<8x64xf32>
    %cst_53 = arith.constant 2.000000e+00 : f32
    %93 = vector.broadcast %cst_53 : f32 to vector<8x64xf32>
    %94 = arith.mulf %93, %92 : vector<8x64xf32>
    %cst_54 = arith.constant 1.000000e+00 : f32
    %95 = vector.broadcast %cst_54 : f32 to vector<8x64xf32>
    %96 = arith.subf %94, %95 : vector<8x64xf32>
    %97 = arith.mulf %89, %80 : vector<8x64xf32>
    %98 = arith.mulf %90, %96 : vector<8x64xf32>
    %99 = arith.addf %97, %98 : vector<8x64xf32>
    %100 = math.tanh %99 : vector<8x64xf32>
    %101 = arith.mulf %91, %100 : vector<8x64xf32>
    %c0_55 = arith.constant 0 : index
    %c0_56 = arith.constant 0 : index
    %102 = vector.load %arg5[%c0_55, %c0_56] : memref<71x256xf32, #tpu.memory_space<vmem>>, vector<64x256xf32>
    %cst_57 = arith.constant dense<0.000000e+00> : vector<8x256xf32>
    %103 = tpu.matmul %101, %102, %cst_57 {dimension_numbers = #tpu.dot_dimension_numbers<[1], [0], [0], [1], [0, 0, 1, 1], [], []>} : vector<8x64xf32>, vector<64x256xf32>, vector<8x256xf32> -> vector<8x256xf32>
    %104 = arith.addf %11, %103 : vector<8x256xf32>
    %105 = arith.negf %104 : vector<8x256xf32>
    %106 = math.exp %105 : vector<8x256xf32>
    %cst_58 = arith.constant 1.000000e+00 : f32
    %107 = vector.broadcast %cst_58 : f32 to vector<8x256xf32>
    %108 = arith.addf %107, %106 : vector<8x256xf32>
    %109 = arith.divf %107, %108 : vector<8x256xf32>
    %110 = vector.extract_strided_slice %109 {offsets = [0, 0], sizes = [8, 64], strides = [1, 1]} : vector<8x256xf32> to vector<8x64xf32>
    %111 = vector.extract_strided_slice %109 {offsets = [0, 64], sizes = [8, 64], strides = [1, 1]} : vector<8x256xf32> to vector<8x64xf32>
    %112 = vector.extract_strided_slice %109 {offsets = [0, 128], sizes = [8, 64], strides = [1, 1]} : vector<8x256xf32> to vector<8x64xf32>
    %113 = vector.extract_strided_slice %109 {offsets = [0, 192], sizes = [8, 64], strides = [1, 1]} : vector<8x256xf32> to vector<8x64xf32>
    %cst_59 = arith.constant 2.000000e+00 : f32
    %114 = vector.broadcast %cst_59 : f32 to vector<8x64xf32>
    %115 = arith.mulf %114, %113 : vector<8x64xf32>
    %cst_60 = arith.constant 1.000000e+00 : f32
    %116 = vector.broadcast %cst_60 : f32 to vector<8x64xf32>
    %117 = arith.subf %115, %116 : vector<8x64xf32>
    %118 = arith.mulf %110, %99 : vector<8x64xf32>
    %119 = arith.mulf %111, %117 : vector<8x64xf32>
    %120 = arith.addf %118, %119 : vector<8x64xf32>
    %121 = math.tanh %120 : vector<8x64xf32>
    %122 = arith.mulf %112, %121 : vector<8x64xf32>
    %c0_61 = arith.constant 0 : index
    %c0_62 = arith.constant 0 : index
    %123 = vector.load %arg5[%c0_61, %c0_62] : memref<71x256xf32, #tpu.memory_space<vmem>>, vector<64x256xf32>
    %cst_63 = arith.constant dense<0.000000e+00> : vector<8x256xf32>
    %124 = tpu.matmul %122, %123, %cst_63 {dimension_numbers = #tpu.dot_dimension_numbers<[1], [0], [0], [1], [0, 0, 1, 1], [], []>} : vector<8x64xf32>, vector<64x256xf32>, vector<8x256xf32> -> vector<8x256xf32>
    %125 = arith.addf %16, %124 : vector<8x256xf32>
    %126 = arith.negf %125 : vector<8x256xf32>
    %127 = math.exp %126 : vector<8x256xf32>
    %cst_64 = arith.constant 1.000000e+00 : f32
    %128 = vector.broadcast %cst_64 : f32 to vector<8x256xf32>
    %129 = arith.addf %128, %127 : vector<8x256xf32>
    %130 = arith.divf %128, %129 : vector<8x256xf32>
    %131 = vector.extract_strided_slice %130 {offsets = [0, 0], sizes = [8, 64], strides = [1, 1]} : vector<8x256xf32> to vector<8x64xf32>
    %132 = vector.extract_strided_slice %130 {offsets = [0, 64], sizes = [8, 64], strides = [1, 1]} : vector<8x256xf32> to vector<8x64xf32>
    %133 = vector.extract_strided_slice %130 {offsets = [0, 128], sizes = [8, 64], strides = [1, 1]} : vector<8x256xf32> to vector<8x64xf32>
    %134 = vector.extract_strided_slice %130 {offsets = [0, 192], sizes = [8, 64], strides = [1, 1]} : vector<8x256xf32> to vector<8x64xf32>
    %cst_65 = arith.constant 2.000000e+00 : f32
    %135 = vector.broadcast %cst_65 : f32 to vector<8x64xf32>
    %136 = arith.mulf %135, %134 : vector<8x64xf32>
    %cst_66 = arith.constant 1.000000e+00 : f32
    %137 = vector.broadcast %cst_66 : f32 to vector<8x64xf32>
    %138 = arith.subf %136, %137 : vector<8x64xf32>
    %139 = arith.mulf %131, %120 : vector<8x64xf32>
    %140 = arith.mulf %132, %138 : vector<8x64xf32>
    %141 = arith.addf %139, %140 : vector<8x64xf32>
    %142 = math.tanh %141 : vector<8x64xf32>
    %143 = arith.mulf %133, %142 : vector<8x64xf32>
    %c0_67 = arith.constant 0 : index
    %c0_68 = arith.constant 0 : index
    %144 = vector.load %arg5[%c0_67, %c0_68] : memref<71x256xf32, #tpu.memory_space<vmem>>, vector<64x256xf32>
    %cst_69 = arith.constant dense<0.000000e+00> : vector<8x256xf32>
    %145 = tpu.matmul %143, %144, %cst_69 {dimension_numbers = #tpu.dot_dimension_numbers<[1], [0], [0], [1], [0, 0, 1, 1], [], []>} : vector<8x64xf32>, vector<64x256xf32>, vector<8x256xf32> -> vector<8x256xf32>
    %146 = arith.addf %21, %145 : vector<8x256xf32>
    %147 = arith.negf %146 : vector<8x256xf32>
    %148 = math.exp %147 : vector<8x256xf32>
    %cst_70 = arith.constant 1.000000e+00 : f32
    %149 = vector.broadcast %cst_70 : f32 to vector<8x256xf32>
    %150 = arith.addf %149, %148 : vector<8x256xf32>
    %151 = arith.divf %149, %150 : vector<8x256xf32>
    %152 = vector.extract_strided_slice %151 {offsets = [0, 0], sizes = [8, 64], strides = [1, 1]} : vector<8x256xf32> to vector<8x64xf32>
    %153 = vector.extract_strided_slice %151 {offsets = [0, 64], sizes = [8, 64], strides = [1, 1]} : vector<8x256xf32> to vector<8x64xf32>
    %154 = vector.extract_strided_slice %151 {offsets = [0, 128], sizes = [8, 64], strides = [1, 1]} : vector<8x256xf32> to vector<8x64xf32>
    %155 = vector.extract_strided_slice %151 {offsets = [0, 192], sizes = [8, 64], strides = [1, 1]} : vector<8x256xf32> to vector<8x64xf32>
    %cst_71 = arith.constant 2.000000e+00 : f32
    %156 = vector.broadcast %cst_71 : f32 to vector<8x64xf32>
    %157 = arith.mulf %156, %155 : vector<8x64xf32>
    %cst_72 = arith.constant 1.000000e+00 : f32
    %158 = vector.broadcast %cst_72 : f32 to vector<8x64xf32>
    %159 = arith.subf %157, %158 : vector<8x64xf32>
    %160 = arith.mulf %152, %141 : vector<8x64xf32>
    %161 = arith.mulf %153, %159 : vector<8x64xf32>
    %162 = arith.addf %160, %161 : vector<8x64xf32>
    %163 = math.tanh %162 : vector<8x64xf32>
    %164 = arith.mulf %154, %163 : vector<8x64xf32>
    %c0_73 = arith.constant 0 : index
    %c0_74 = arith.constant 0 : index
    %165 = vector.load %arg5[%c0_73, %c0_74] : memref<71x256xf32, #tpu.memory_space<vmem>>, vector<64x256xf32>
    %cst_75 = arith.constant dense<0.000000e+00> : vector<8x256xf32>
    %166 = tpu.matmul %164, %165, %cst_75 {dimension_numbers = #tpu.dot_dimension_numbers<[1], [0], [0], [1], [0, 0, 1, 1], [], []>} : vector<8x64xf32>, vector<64x256xf32>, vector<8x256xf32> -> vector<8x256xf32>
    %167 = arith.addf %26, %166 : vector<8x256xf32>
    %168 = arith.negf %167 : vector<8x256xf32>
    %169 = math.exp %168 : vector<8x256xf32>
    %cst_76 = arith.constant 1.000000e+00 : f32
    %170 = vector.broadcast %cst_76 : f32 to vector<8x256xf32>
    %171 = arith.addf %170, %169 : vector<8x256xf32>
    %172 = arith.divf %170, %171 : vector<8x256xf32>
    %173 = vector.extract_strided_slice %172 {offsets = [0, 0], sizes = [8, 64], strides = [1, 1]} : vector<8x256xf32> to vector<8x64xf32>
    %174 = vector.extract_strided_slice %172 {offsets = [0, 64], sizes = [8, 64], strides = [1, 1]} : vector<8x256xf32> to vector<8x64xf32>
    %175 = vector.extract_strided_slice %172 {offsets = [0, 128], sizes = [8, 64], strides = [1, 1]} : vector<8x256xf32> to vector<8x64xf32>
    %176 = vector.extract_strided_slice %172 {offsets = [0, 192], sizes = [8, 64], strides = [1, 1]} : vector<8x256xf32> to vector<8x64xf32>
    %cst_77 = arith.constant 2.000000e+00 : f32
    %177 = vector.broadcast %cst_77 : f32 to vector<8x64xf32>
    %178 = arith.mulf %177, %176 : vector<8x64xf32>
    %cst_78 = arith.constant 1.000000e+00 : f32
    %179 = vector.broadcast %cst_78 : f32 to vector<8x64xf32>
    %180 = arith.subf %178, %179 : vector<8x64xf32>
    %181 = arith.mulf %173, %162 : vector<8x64xf32>
    %182 = arith.mulf %174, %180 : vector<8x64xf32>
    %183 = arith.addf %181, %182 : vector<8x64xf32>
    %184 = math.tanh %183 : vector<8x64xf32>
    %185 = arith.mulf %175, %184 : vector<8x64xf32>
    %c0_79 = arith.constant 0 : index
    %c0_80 = arith.constant 0 : index
    %186 = vector.load %arg5[%c0_79, %c0_80] : memref<71x256xf32, #tpu.memory_space<vmem>>, vector<64x256xf32>
    %cst_81 = arith.constant dense<0.000000e+00> : vector<8x256xf32>
    %187 = tpu.matmul %185, %186, %cst_81 {dimension_numbers = #tpu.dot_dimension_numbers<[1], [0], [0], [1], [0, 0, 1, 1], [], []>} : vector<8x64xf32>, vector<64x256xf32>, vector<8x256xf32> -> vector<8x256xf32>
    %188 = arith.addf %31, %187 : vector<8x256xf32>
    %189 = arith.negf %188 : vector<8x256xf32>
    %190 = math.exp %189 : vector<8x256xf32>
    %cst_82 = arith.constant 1.000000e+00 : f32
    %191 = vector.broadcast %cst_82 : f32 to vector<8x256xf32>
    %192 = arith.addf %191, %190 : vector<8x256xf32>
    %193 = arith.divf %191, %192 : vector<8x256xf32>
    %194 = vector.extract_strided_slice %193 {offsets = [0, 0], sizes = [8, 64], strides = [1, 1]} : vector<8x256xf32> to vector<8x64xf32>
    %195 = vector.extract_strided_slice %193 {offsets = [0, 64], sizes = [8, 64], strides = [1, 1]} : vector<8x256xf32> to vector<8x64xf32>
    %196 = vector.extract_strided_slice %193 {offsets = [0, 128], sizes = [8, 64], strides = [1, 1]} : vector<8x256xf32> to vector<8x64xf32>
    %197 = vector.extract_strided_slice %193 {offsets = [0, 192], sizes = [8, 64], strides = [1, 1]} : vector<8x256xf32> to vector<8x64xf32>
    %cst_83 = arith.constant 2.000000e+00 : f32
    %198 = vector.broadcast %cst_83 : f32 to vector<8x64xf32>
    %199 = arith.mulf %198, %197 : vector<8x64xf32>
    %cst_84 = arith.constant 1.000000e+00 : f32
    %200 = vector.broadcast %cst_84 : f32 to vector<8x64xf32>
    %201 = arith.subf %199, %200 : vector<8x64xf32>
    %202 = arith.mulf %194, %183 : vector<8x64xf32>
    %203 = arith.mulf %195, %201 : vector<8x64xf32>
    %204 = arith.addf %202, %203 : vector<8x64xf32>
    %205 = math.tanh %204 : vector<8x64xf32>
    %206 = arith.mulf %196, %205 : vector<8x64xf32>
    %c0_85 = arith.constant 0 : index
    %c0_86 = arith.constant 0 : index
    %207 = vector.load %arg5[%c0_85, %c0_86] : memref<71x256xf32, #tpu.memory_space<vmem>>, vector<64x256xf32>
    %cst_87 = arith.constant dense<0.000000e+00> : vector<8x256xf32>
    %208 = tpu.matmul %206, %207, %cst_87 {dimension_numbers = #tpu.dot_dimension_numbers<[1], [0], [0], [1], [0, 0, 1, 1], [], []>} : vector<8x64xf32>, vector<64x256xf32>, vector<8x256xf32> -> vector<8x256xf32>
    %209 = arith.addf %36, %208 : vector<8x256xf32>
    %210 = arith.negf %209 : vector<8x256xf32>
    %211 = math.exp %210 : vector<8x256xf32>
    %cst_88 = arith.constant 1.000000e+00 : f32
    %212 = vector.broadcast %cst_88 : f32 to vector<8x256xf32>
    %213 = arith.addf %212, %211 : vector<8x256xf32>
    %214 = arith.divf %212, %213 : vector<8x256xf32>
    %215 = vector.extract_strided_slice %214 {offsets = [0, 0], sizes = [8, 64], strides = [1, 1]} : vector<8x256xf32> to vector<8x64xf32>
    %216 = vector.extract_strided_slice %214 {offsets = [0, 64], sizes = [8, 64], strides = [1, 1]} : vector<8x256xf32> to vector<8x64xf32>
    %217 = vector.extract_strided_slice %214 {offsets = [0, 128], sizes = [8, 64], strides = [1, 1]} : vector<8x256xf32> to vector<8x64xf32>
    %218 = vector.extract_strided_slice %214 {offsets = [0, 192], sizes = [8, 64], strides = [1, 1]} : vector<8x256xf32> to vector<8x64xf32>
    %cst_89 = arith.constant 2.000000e+00 : f32
    %219 = vector.broadcast %cst_89 : f32 to vector<8x64xf32>
    %220 = arith.mulf %219, %218 : vector<8x64xf32>
    %cst_90 = arith.constant 1.000000e+00 : f32
    %221 = vector.broadcast %cst_90 : f32 to vector<8x64xf32>
    %222 = arith.subf %220, %221 : vector<8x64xf32>
    %223 = arith.mulf %215, %204 : vector<8x64xf32>
    %224 = arith.mulf %216, %222 : vector<8x64xf32>
    %225 = arith.addf %223, %224 : vector<8x64xf32>
    %226 = math.tanh %225 : vector<8x64xf32>
    %227 = arith.mulf %217, %226 : vector<8x64xf32>
    %c0_91 = arith.constant 0 : index
    %c0_92 = arith.constant 0 : index
    %228 = vector.load %arg5[%c0_91, %c0_92] : memref<71x256xf32, #tpu.memory_space<vmem>>, vector<64x256xf32>
    %cst_93 = arith.constant dense<0.000000e+00> : vector<8x256xf32>
    %229 = tpu.matmul %227, %228, %cst_93 {dimension_numbers = #tpu.dot_dimension_numbers<[1], [0], [0], [1], [0, 0, 1, 1], [], []>} : vector<8x64xf32>, vector<64x256xf32>, vector<8x256xf32> -> vector<8x256xf32>
    %230 = arith.addf %41, %229 : vector<8x256xf32>
    %231 = arith.negf %230 : vector<8x256xf32>
    %232 = math.exp %231 : vector<8x256xf32>
    %cst_94 = arith.constant 1.000000e+00 : f32
    %233 = vector.broadcast %cst_94 : f32 to vector<8x256xf32>
    %234 = arith.addf %233, %232 : vector<8x256xf32>
    %235 = arith.divf %233, %234 : vector<8x256xf32>
    %236 = vector.extract_strided_slice %235 {offsets = [0, 0], sizes = [8, 64], strides = [1, 1]} : vector<8x256xf32> to vector<8x64xf32>
    %237 = vector.extract_strided_slice %235 {offsets = [0, 64], sizes = [8, 64], strides = [1, 1]} : vector<8x256xf32> to vector<8x64xf32>
    %238 = vector.extract_strided_slice %235 {offsets = [0, 128], sizes = [8, 64], strides = [1, 1]} : vector<8x256xf32> to vector<8x64xf32>
    %239 = vector.extract_strided_slice %235 {offsets = [0, 192], sizes = [8, 64], strides = [1, 1]} : vector<8x256xf32> to vector<8x64xf32>
    %cst_95 = arith.constant 2.000000e+00 : f32
    %240 = vector.broadcast %cst_95 : f32 to vector<8x64xf32>
    %241 = arith.mulf %240, %239 : vector<8x64xf32>
    %cst_96 = arith.constant 1.000000e+00 : f32
    %242 = vector.broadcast %cst_96 : f32 to vector<8x64xf32>
    %243 = arith.subf %241, %242 : vector<8x64xf32>
    %244 = arith.mulf %236, %225 : vector<8x64xf32>
    %245 = arith.mulf %237, %243 : vector<8x64xf32>
    %246 = arith.addf %244, %245 : vector<8x64xf32>
    %247 = math.tanh %246 : vector<8x64xf32>
    %248 = arith.mulf %238, %247 : vector<8x64xf32>
    %c0_97 = arith.constant 0 : index
    %c0_98 = arith.constant 0 : index
    %249 = vector.load %arg5[%c0_97, %c0_98] : memref<71x256xf32, #tpu.memory_space<vmem>>, vector<64x256xf32>
    %cst_99 = arith.constant dense<0.000000e+00> : vector<8x256xf32>
    %250 = tpu.matmul %248, %249, %cst_99 {dimension_numbers = #tpu.dot_dimension_numbers<[1], [0], [0], [1], [0, 0, 1, 1], [], []>} : vector<8x64xf32>, vector<64x256xf32>, vector<8x256xf32> -> vector<8x256xf32>
    %251 = arith.addf %46, %250 : vector<8x256xf32>
    %252 = arith.negf %251 : vector<8x256xf32>
    %253 = math.exp %252 : vector<8x256xf32>
    %cst_100 = arith.constant 1.000000e+00 : f32
    %254 = vector.broadcast %cst_100 : f32 to vector<8x256xf32>
    %255 = arith.addf %254, %253 : vector<8x256xf32>
    %256 = arith.divf %254, %255 : vector<8x256xf32>
    %257 = vector.extract_strided_slice %256 {offsets = [0, 0], sizes = [8, 64], strides = [1, 1]} : vector<8x256xf32> to vector<8x64xf32>
    %258 = vector.extract_strided_slice %256 {offsets = [0, 64], sizes = [8, 64], strides = [1, 1]} : vector<8x256xf32> to vector<8x64xf32>
    %259 = vector.extract_strided_slice %256 {offsets = [0, 128], sizes = [8, 64], strides = [1, 1]} : vector<8x256xf32> to vector<8x64xf32>
    %260 = vector.extract_strided_slice %256 {offsets = [0, 192], sizes = [8, 64], strides = [1, 1]} : vector<8x256xf32> to vector<8x64xf32>
    %cst_101 = arith.constant 2.000000e+00 : f32
    %261 = vector.broadcast %cst_101 : f32 to vector<8x64xf32>
    %262 = arith.mulf %261, %260 : vector<8x64xf32>
    %cst_102 = arith.constant 1.000000e+00 : f32
    %263 = vector.broadcast %cst_102 : f32 to vector<8x64xf32>
    %264 = arith.subf %262, %263 : vector<8x64xf32>
    %265 = arith.mulf %257, %246 : vector<8x64xf32>
    %266 = arith.mulf %258, %264 : vector<8x64xf32>
    %267 = arith.addf %265, %266 : vector<8x64xf32>
    %268 = math.tanh %267 : vector<8x64xf32>
    %269 = arith.mulf %259, %268 : vector<8x64xf32>
    %c0_103 = arith.constant 0 : index
    %c0_104 = arith.constant 0 : index
    %270 = vector.load %arg5[%c0_103, %c0_104] : memref<71x256xf32, #tpu.memory_space<vmem>>, vector<64x256xf32>
    %cst_105 = arith.constant dense<0.000000e+00> : vector<8x256xf32>
    %271 = tpu.matmul %269, %270, %cst_105 {dimension_numbers = #tpu.dot_dimension_numbers<[1], [0], [0], [1], [0, 0, 1, 1], [], []>} : vector<8x64xf32>, vector<64x256xf32>, vector<8x256xf32> -> vector<8x256xf32>
    %272 = arith.addf %51, %271 : vector<8x256xf32>
    %273 = arith.negf %272 : vector<8x256xf32>
    %274 = math.exp %273 : vector<8x256xf32>
    %cst_106 = arith.constant 1.000000e+00 : f32
    %275 = vector.broadcast %cst_106 : f32 to vector<8x256xf32>
    %276 = arith.addf %275, %274 : vector<8x256xf32>
    %277 = arith.divf %275, %276 : vector<8x256xf32>
    %278 = vector.extract_strided_slice %277 {offsets = [0, 0], sizes = [8, 64], strides = [1, 1]} : vector<8x256xf32> to vector<8x64xf32>
    %279 = vector.extract_strided_slice %277 {offsets = [0, 64], sizes = [8, 64], strides = [1, 1]} : vector<8x256xf32> to vector<8x64xf32>
    %280 = vector.extract_strided_slice %277 {offsets = [0, 128], sizes = [8, 64], strides = [1, 1]} : vector<8x256xf32> to vector<8x64xf32>
    %281 = vector.extract_strided_slice %277 {offsets = [0, 192], sizes = [8, 64], strides = [1, 1]} : vector<8x256xf32> to vector<8x64xf32>
    %cst_107 = arith.constant 2.000000e+00 : f32
    %282 = vector.broadcast %cst_107 : f32 to vector<8x64xf32>
    %283 = arith.mulf %282, %281 : vector<8x64xf32>
    %cst_108 = arith.constant 1.000000e+00 : f32
    %284 = vector.broadcast %cst_108 : f32 to vector<8x64xf32>
    %285 = arith.subf %283, %284 : vector<8x64xf32>
    %286 = arith.mulf %278, %267 : vector<8x64xf32>
    %287 = arith.mulf %279, %285 : vector<8x64xf32>
    %288 = arith.addf %286, %287 : vector<8x64xf32>
    %289 = math.tanh %288 : vector<8x64xf32>
    %290 = arith.mulf %280, %289 : vector<8x64xf32>
    %c0_109 = arith.constant 0 : index
    %c0_110 = arith.constant 0 : index
    %291 = vector.load %arg5[%c0_109, %c0_110] : memref<71x256xf32, #tpu.memory_space<vmem>>, vector<64x256xf32>
    %cst_111 = arith.constant dense<0.000000e+00> : vector<8x256xf32>
    %292 = tpu.matmul %290, %291, %cst_111 {dimension_numbers = #tpu.dot_dimension_numbers<[1], [0], [0], [1], [0, 0, 1, 1], [], []>} : vector<8x64xf32>, vector<64x256xf32>, vector<8x256xf32> -> vector<8x256xf32>
    %293 = arith.addf %56, %292 : vector<8x256xf32>
    %294 = arith.negf %293 : vector<8x256xf32>
    %295 = math.exp %294 : vector<8x256xf32>
    %cst_112 = arith.constant 1.000000e+00 : f32
    %296 = vector.broadcast %cst_112 : f32 to vector<8x256xf32>
    %297 = arith.addf %296, %295 : vector<8x256xf32>
    %298 = arith.divf %296, %297 : vector<8x256xf32>
    %299 = vector.extract_strided_slice %298 {offsets = [0, 0], sizes = [8, 64], strides = [1, 1]} : vector<8x256xf32> to vector<8x64xf32>
    %300 = vector.extract_strided_slice %298 {offsets = [0, 64], sizes = [8, 64], strides = [1, 1]} : vector<8x256xf32> to vector<8x64xf32>
    %301 = vector.extract_strided_slice %298 {offsets = [0, 128], sizes = [8, 64], strides = [1, 1]} : vector<8x256xf32> to vector<8x64xf32>
    %302 = vector.extract_strided_slice %298 {offsets = [0, 192], sizes = [8, 64], strides = [1, 1]} : vector<8x256xf32> to vector<8x64xf32>
    %cst_113 = arith.constant 2.000000e+00 : f32
    %303 = vector.broadcast %cst_113 : f32 to vector<8x64xf32>
    %304 = arith.mulf %303, %302 : vector<8x64xf32>
    %cst_114 = arith.constant 1.000000e+00 : f32
    %305 = vector.broadcast %cst_114 : f32 to vector<8x64xf32>
    %306 = arith.subf %304, %305 : vector<8x64xf32>
    %307 = arith.mulf %299, %288 : vector<8x64xf32>
    %308 = arith.mulf %300, %306 : vector<8x64xf32>
    %309 = arith.addf %307, %308 : vector<8x64xf32>
    %310 = math.tanh %309 : vector<8x64xf32>
    %311 = arith.mulf %301, %310 : vector<8x64xf32>
    %c0_115 = arith.constant 0 : index
    %c0_116 = arith.constant 0 : index
    %312 = vector.load %arg5[%c0_115, %c0_116] : memref<71x256xf32, #tpu.memory_space<vmem>>, vector<64x256xf32>
    %cst_117 = arith.constant dense<0.000000e+00> : vector<8x256xf32>
    %313 = tpu.matmul %311, %312, %cst_117 {dimension_numbers = #tpu.dot_dimension_numbers<[1], [0], [0], [1], [0, 0, 1, 1], [], []>} : vector<8x64xf32>, vector<64x256xf32>, vector<8x256xf32> -> vector<8x256xf32>
    %314 = arith.addf %61, %313 : vector<8x256xf32>
    %315 = arith.negf %314 : vector<8x256xf32>
    %316 = math.exp %315 : vector<8x256xf32>
    %cst_118 = arith.constant 1.000000e+00 : f32
    %317 = vector.broadcast %cst_118 : f32 to vector<8x256xf32>
    %318 = arith.addf %317, %316 : vector<8x256xf32>
    %319 = arith.divf %317, %318 : vector<8x256xf32>
    %320 = vector.extract_strided_slice %319 {offsets = [0, 0], sizes = [8, 64], strides = [1, 1]} : vector<8x256xf32> to vector<8x64xf32>
    %321 = vector.extract_strided_slice %319 {offsets = [0, 64], sizes = [8, 64], strides = [1, 1]} : vector<8x256xf32> to vector<8x64xf32>
    %322 = vector.extract_strided_slice %319 {offsets = [0, 128], sizes = [8, 64], strides = [1, 1]} : vector<8x256xf32> to vector<8x64xf32>
    %323 = vector.extract_strided_slice %319 {offsets = [0, 192], sizes = [8, 64], strides = [1, 1]} : vector<8x256xf32> to vector<8x64xf32>
    %cst_119 = arith.constant 2.000000e+00 : f32
    %324 = vector.broadcast %cst_119 : f32 to vector<8x64xf32>
    %325 = arith.mulf %324, %323 : vector<8x64xf32>
    %cst_120 = arith.constant 1.000000e+00 : f32
    %326 = vector.broadcast %cst_120 : f32 to vector<8x64xf32>
    %327 = arith.subf %325, %326 : vector<8x64xf32>
    %328 = arith.mulf %320, %309 : vector<8x64xf32>
    %329 = arith.mulf %321, %327 : vector<8x64xf32>
    %330 = arith.addf %328, %329 : vector<8x64xf32>
    %331 = math.tanh %330 : vector<8x64xf32>
    %332 = arith.mulf %322, %331 : vector<8x64xf32>
    %c0_121 = arith.constant 0 : index
    %c0_122 = arith.constant 0 : index
    %333 = vector.load %arg6[%c0_121, %c0_122] : memref<67x64xf32, #tpu.memory_space<vmem>>, vector<64x64xf32>
    %c64_123 = arith.constant 64 : index
    %c0_124 = arith.constant 0 : index
    %334 = vector.load %arg6[%c64_123, %c0_124] : memref<67x64xf32, #tpu.memory_space<vmem>>, vector<1x64xf32>
    %c65 = arith.constant 65 : index
    %c0_125 = arith.constant 0 : index
    %335 = vector.load %arg6[%c65, %c0_125] : memref<67x64xf32, #tpu.memory_space<vmem>>, vector<1x64xf32>
    %c66 = arith.constant 66 : index
    %c0_126 = arith.constant 0 : index
    %336 = vector.load %arg6[%c66, %c0_126] : memref<67x64xf32, #tpu.memory_space<vmem>>, vector<1x1xf32>
    %cst_127 = arith.constant dense<0.000000e+00> : vector<8x64xf32>
    %337 = tpu.matmul %332, %333, %cst_127 {dimension_numbers = #tpu.dot_dimension_numbers<[1], [0], [0], [1], [0, 0, 1, 1], [], []>} : vector<8x64xf32>, vector<64x64xf32>, vector<8x64xf32> -> vector<8x64xf32>
    %338 = arith.addf %337, %78 : vector<8x64xf32>
    %339 = vector.broadcast %334 : vector<1x64xf32> to vector<8x64xf32>
    %340 = arith.addf %338, %339 : vector<8x64xf32>
    %cst_128 = arith.constant 0.000000e+00 : f32
    %341 = vector.broadcast %cst_128 : f32 to vector<8x64xf32>
    %342 = arith.maximumf %340, %341 : vector<8x64xf32>
    %343 = vector.broadcast %335 : vector<1x64xf32> to vector<8x64xf32>
    %344 = arith.mulf %342, %343 : vector<8x64xf32>
    %cst_129 = arith.constant dense<0.000000e+00> : vector<8xf32>
    %345 = vector.multi_reduction <add>, %344, %cst_129 [1] : vector<8x64xf32> to vector<8xf32>
    %346 = vector.shape_cast %345 : vector<8xf32> to vector<8x1xf32>
    %347 = vector.broadcast %336 : vector<1x1xf32> to vector<8x1xf32>
    %348 = arith.addf %346, %347 : vector<8x1xf32>
    %349 = arith.negf %348 : vector<8x1xf32>
    %350 = math.exp %349 : vector<8x1xf32>
    %cst_130 = arith.constant 1.000000e+00 : f32
    %351 = vector.broadcast %cst_130 : f32 to vector<8x1xf32>
    %352 = arith.addf %351, %350 : vector<8x1xf32>
    %353 = arith.divf %351, %352 : vector<8x1xf32>
    %c0_131 = arith.constant 0 : index
    %c0_132 = arith.constant 0 : index
    %354 = vector.load %arg7[%c0_131, %c0_132] : memref<8x1xf32, #tpu.memory_space<vmem>>, vector<8x1xf32>
    tpu.vector_store %arg7[%c0_131, %c0_132], %353 {strides = array<i32>} : memref<8x1xf32, #tpu.memory_space<vmem>>, vector<8x1xf32>,
    return
  }
}

</mosaic_0001>

<bundles_post_ra>
// kernel: flow_ratio_predict.1
= control target key start
LH: loop header
LB: loop body
LE: loop exit
PB: predicated region body
PF: predicated region fallthrough
CT: control target
= control target key end

     0   :  { %vm40_vm0 = vcmask 1045504   ;;  %vm36_vm1 = vcmask 48128   ;;  %v2285_v0 = vmov 0   ;;  %vm679_vm2 = vcmask 1041408   ;;  %s3186_s1 = inlined_call_operand.vmem [shape: s32[8,1], index: 1, kind: input, shape index: {}]   ;;  %s3187_s5 = inlined_call_operand.vmem [shape: f32[71,256], index: 5, kind: input, shape index: {}]   ;;  %s3188_s0 = inlined_call_operand.vmem [shape: f32[12,8,6], index: 0, kind: input, shape index: {}]   ;;  %s3189_s2 = inlined_call_operand.vmem [shape: s32[8,1], index: 2, kind: input, shape index: {}]   ;;  %s3190_s3 = inlined_call_operand.vmem [shape: f32[500,64], index: 3, kind: input, shape index: {}]   ;;  %s3191_s4 = inlined_call_operand.vmem [shape: f32[10,64], index: 4, kind: input, shape index: {}]   ;;  %s3192_s6 = inlined_call_operand.vmem [shape: f32[67,64], index: 6, kind: input, shape index: {}]   ;;  %s3193_s7 = inlined_call_operand.vmem [shape: f32[8,1], index: 7, kind: output, shape index: {}]  }
   0x1   :  { %2141 = vset.pattern.permute.xlu0 %v2285_v0  ;;  %v582_v1 = vld [vmem:[%s3186_s1] sm:$0xff]  ;;  %v27_v2 = vld [vmem:[%s3187_s5 + $0x88] sm:$0x3f]  ;;  %v2015_v6 = vld [vmem:[%s3188_s0 + $0x10] sm:$0xff]  ;;  %vm707_vm3 = vcmask 1043456   ;;  %vm675_vm7 = vcmask 80896  }
   0x2   :  { %590 = vperm.xlu0 %2141, %v582_v1   ;;  %2008 = vmatpush.msk.msra.mxu2 %vm40_vm0, %v27_v2  ;;  %v30_v3 = vld [vmem:[%s3188_s0] sm:$0xff]  ;;  %v2010_v5 = vld [vmem:[%s3188_s0 + $0x8] sm:$0xff]  ;;  %v2020_v8 = vld [vmem:[%s3188_s0 + $0x18] sm:$0xff]  ;;  %vm703_vm10 = vcmask 949248   ;;  %s2288_s1 = smov 64  }
   0x3   :  { %v26_v4 = vld [vmem:[%s3187_s5 + $0x80] sm:$0x3f]  ;;  %2009 = vmatmul.msk.f32.vlgmr.msra.gmra.mxu2 %vm36_vm1, %v30_v3  ;;  %2013 = vmatpush.msk.msra.mxu3 %vm40_vm0, %v27_v2  ;;  %v2030_v10 = vld [vmem:[%s3188_s0 + $0x28] sm:$0xff]  ;;  %v2035_v11 = vld [vmem:[%s3188_s0 + $0x30] sm:$0xff] }
   0x4   :  { %2011 = vmatpush.msk.msrb.mxu2 %vm40_vm0, %v26_v4  ;;  %2014 = vmatmul.msk.f32.vlgmr.msra.gmra.mxu3 %vm36_vm1, %v2010_v5  ;;  %v583_v7 = vld [vmem:[%s3189_s2] sm:$0xff]  ;;  %v2040_v12 = vld [vmem:[%s3188_s0 + $0x38] sm:$0xff]  ;;  %v624_v15 = vld [vmem:[%s3190_s3 + $0x70] sm:$0xff] }
   0x5   :  { %2018 = vmatpush.msk.msra.mxu1 %vm40_vm0, %v27_v2  ;;  %2023 = vmatpush.msk.msrb.mxu3 %vm40_vm0, %v27_v2  ;;  %v2025_v9 = vld [vmem:[%s3188_s0 + $0x20] sm:$0xff]  ;;  %v625_v14 = vld [vmem:[%s3190_s3 + $0x78] sm:$0xff]  ;;  %v623_v16 = vld [vmem:[%s3190_s3 + $0x68] sm:$0xff] }
   0x6   :  { %2021 = vmatpush.msk.msra.mxu2 %vm40_vm0, %v26_v4  ;;  %2019 = vmatmul.msk.f32.vlgmr.msra.gmra.mxu1 %vm36_vm1, %v2015_v6  ;;  %v2045_v13 = vld [vmem:[%s3188_s0 + $0x40] sm:$0xff]  ;;  %v657_v18 = vld [vmem:[%s3190_s3 + $0x178] sm:$0xff]  ;;  %v2050_v19 = vld [vmem:[%s3188_s0 + $0x48] sm:$0xff] }
   0x7   :  { %2028 = vmatpush.msk.msrb.mxu1 %vm40_vm0, %v27_v2  ;;  %2006 = vmatpush.msk.msra.mxu0 %vm40_vm0, %v26_v4  ;;  %v622_v17 = vld [vmem:[%s3190_s3 + $0x60] sm:$0xff]  ;;  %v621_v20 = vld [vmem:[%s3190_s3 + $0x58] sm:$0xff]  ;;  %v656_v21 = vld [vmem:[%s3190_s3 + $0x170] sm:$0xff] }
   0x8   :  { %2007 = vmatmul.msk.f32.vlgmr.msra.gmra.mxu0 %vm36_vm1, %v30_v3  ;;  %2033 = vmatpush.msk.msra.mxu3 %vm40_vm0, %v27_v2  ;;  %v2055_v22 = vld [vmem:[%s3188_s0 + $0x50] sm:$0xff]  ;;  %v655_v24 = vld [vmem:[%s3190_s3 + $0x168] sm:$0xff]  ;;  %v641_v27 = vld [vmem:[%s3190_s3 + $0xf8] sm:$0xff] }
   0x9   :  { %2038 = vmatpush.msk.msra.mxu1 %vm40_vm0, %v27_v2  ;;  %2016 = vmatpush.msk.msrb.mxu0 %vm40_vm0, %v26_v4  ;;  %v620_v23 = vld [vmem:[%s3190_s3 + $0x50] sm:$0xff]  ;;  %v674_v25 = vld [vmem:[%s3191_s4 + $0x8] sm:$0x3]  ;;  %v654_v28 = vld [vmem:[%s3190_s3 + $0x160] sm:$0xff] }
   0xa   :  { %605 = vperm.xlu0 %2141, %v583_v7   ;;  %v619_v26 = vld [vmem:[%s3190_s3 + $0x48] sm:$0xff]  ;;  %v618_v29 = vld [vmem:[%s3190_s3 + $0x40] sm:$0xff]  ;;  %v640_v31 = vld [vmem:[%s3190_s3 + $0xf0] sm:$0xff] }
   0xb   :  { %2026 = vmatpush.msk.msra.mxu0 %vm40_vm0, %v26_v4  ;;  %2012 = vmatmul.msk.f32.vlgmr.msrb.gmra.mxu2 %vm36_vm1, %v2010_v5  ;;  %v673_v30 = vld [vmem:[%s3191_s4] sm:$0xff]  ;;  %v653_v32 = vld [vmem:[%s3190_s3 + $0x158] sm:$0xff]  ;;  %v639_v35 = vld [vmem:[%s3190_s3 + $0xe8] sm:$0xff] }
   0xc   :  { %2024 = vmatmul.msk.f32.vlgmr.msrb.gmra.mxu3 %vm36_vm1, %v2020_v8  ;;  %2031 = vmatpush.msk.msrb.mxu2 %vm40_vm0, %v26_v4  ;;  %v617_v33 = vld [vmem:[%s3190_s3 + $0x38] sm:$0xff]  ;;  %v652_v36 = vld [vmem:[%s3190_s3 + $0x150] sm:$0xff]  ;;  %v638_v38 = vld [vmem:[%s3190_s3 + $0xe0] sm:$0xff] }
   0xd   :  { %2043 = vmatpush.msk.msrb.mxu3 %vm40_vm0, %v27_v2  ;;  %v2060_v34 = vld [vmem:[%s3188_s0 + $0x58] sm:$0xff]  ;;  %v616_v37 = vld [vmem:[%s3190_s3 + $0x30] sm:$0xff]  ;;  %v651_v39 = vld [vmem:[%s3190_s3 + $0x148] sm:$0xff] }
   0xe   :  { %2029 = vmatmul.msk.f32.vlgmr.msrb.gmra.mxu1 %vm36_vm1, %v2025_v9  ;;  %v615_v40 = vld [vmem:[%s3190_s3 + $0x28] sm:$0xff]  ;;  %v672_v41 = vld [vmem:[%s3190_s3 + $0x1f0] sm:$0xf]  ;;  %v637_v42 = vld [vmem:[%s3190_s3 + $0xd8] sm:$0xff] }
   0xf   :  { %2048 = vmatpush.msk.msrb.mxu1 %vm40_vm0, %v27_v2  ;;  %v650_v43 = vld [vmem:[%s3190_s3 + $0x140] sm:$0xff]  ;;  %v671_v45 = vld [vmem:[%s3190_s3 + $0x1e8] sm:$0xff]  ;;  %v636_v46 = vld [vmem:[%s3190_s3 + $0xd0] sm:$0xff] }
  0x10   :  { %2017 = vmatmul.msk.f32.vlgmr.msrb.gmra.mxu0 %vm36_vm1, %v2015_v6  ;;  %v614_v44 = vld [vmem:[%s3190_s3 + $0x20] sm:$0xff]  ;;  %v649_v47 = vld [vmem:[%s3190_s3 + $0x138] sm:$0xff]  ;;  %v635_v49 = vld [vmem:[%s3190_s3 + $0xc8] sm:$0xff] }
  0x11   :  { %2036 = vmatpush.msk.msrb.mxu0 %vm40_vm0, %v26_v4  ;;  %v613_v48 = vld [vmem:[%s3190_s3 + $0x18] sm:$0xff]  ;;  %v648_v50 = vld [vmem:[%s3190_s3 + $0x130] sm:$0xff]  ;;  %v670_v52 = vld [vmem:[%s3190_s3 + $0x1e0] sm:$0xff] }
  0x12   :  { %v612_v51 = vld [vmem:[%s3190_s3 + $0x10] sm:$0xff]  ;;  %v634_v53 = vld [vmem:[%s3190_s3 + $0xc0] sm:$0xff]  ;;  %v647_v54 = vld [vmem:[%s3190_s3 + $0x128] sm:$0xff] }
  0x13   :  { %2022 = vmatmul.msk.f32.vlgmr.msra.gmra.mxu2 %vm36_vm1, %v2020_v8  ;;  %v611_v55 = vld [vmem:[%s3190_s3 + $0x8] sm:$0xff]  ;;  %v669_v56 = vld [vmem:[%s3190_s3 + $0x1d8] sm:$0xff]  ;;  %v646_v58 = vld [vmem:[%s3190_s3 + $0x120] sm:$0xff] }
  0x14   :  { %2034 = vmatmul.msk.f32.vlgmr.msra.gmra.mxu3 %vm36_vm1, %v2030_v10  ;;  %2041 = vmatpush.msk.msra.mxu2 %vm40_vm0, %v26_v4  ;;  %v633_v57 = vld [vmem:[%s3190_s3 + $0xb8] sm:$0xff]  ;;  %v610_v59 = vld [vmem:[%s3190_s3] sm:$0xff]  ;;  %v668_v60 = vld [vmem:[%s3190_s3 + $0x1d0] sm:$0xff] }
  0x15   :  { %2053 = vmatpush.msk.msra.mxu3 %vm40_vm0, %v27_v2  ;;  %v632_v61 = vld [vmem:[%s3190_s3 + $0xb0] sm:$0xff]  ;;  %v645_v62 = vld [vmem:[%s3190_s3 + $0x118] sm:$0xff]  ;;  %v631_v0 = vld [vmem:[%s3190_s3 + $0xa8] sm:$0xff] }
  0x16   :  { %2039 = vmatmul.msk.f32.vlgmr.msra.gmra.mxu1 %vm36_vm1, %v2035_v11  ;;  %v2566_v63 = vld [vmem:[%s3187_s5 + $0x70] sm:$0xff]  ;;  %v630_v3 = vld [vmem:[%s3190_s3 + $0xa0] sm:$0xff]  ;;  %v629_v6 = vld [vmem:[%s3190_s3 + $0x98] sm:$0xff] }
  0x17   :  { %2058 = vmatpush.msk.msra.mxu1 %vm40_vm0, %v27_v2  ;;  %v644_v1 = vld [vmem:[%s3190_s3 + $0x110] sm:$0xff]  ;;  %v627_v8 = vld [vmem:[%s3190_s3 + $0x88] sm:$0xff] }
  0x18   :  { %2027 = vmatmul.msk.f32.vlgmr.msra.gmra.mxu0 %vm36_vm1, %v2025_v9  ;;  %v2589_v5 = vld [vmem:[%s3187_s5 + $0x50] sm:$0xff]  ;;  %v626_v9 = vld [vmem:[%s3190_s3 + $0x80] sm:$0xff] }
  0x19   :  { %2046 = vmatpush.msk.msra.mxu0 %vm40_vm0, %v26_v4  ;;  %v628_v7 = vld [vmem:[%s3190_s3 + $0x90] sm:$0xff] }
  0x1b   :  { %2032 = vmatmul.msk.f32.vlgmr.msrb.gmra.mxu2 %vm36_vm1, %v2030_v10  ;;  %v2608_v10 = vld [vmem:[%s3187_s5 + $0x78] sm:$0xff] }
  0x1c   :  { %2051 = vmatpush.msk.msrb.mxu2 %vm40_vm0, %v26_v4  ;;  %2044 = vmatmul.msk.f32.vlgmr.msrb.gmra.mxu3 %vm36_vm1, %v2040_v12 }
  0x1d   :  { %2063 = vmatpush.msk.msrb.mxu3 %vm40_vm0, %v27_v2  ;;  %v2577_v2 = vld [vmem:[%s3187_s5 + $0x60] sm:$0xff] }
  0x1e   :  { %2049 = vmatmul.msk.f32.vlgmr.msrb.gmra.mxu1 %vm36_vm1, %v2045_v13 }
  0x1f   :  { %711 = vmatpush.msrb.mxu1 %v625_v14  ;;  %v642_v14 = vld [vmem:[%s3190_s3 + $0x100] sm:$0xff] }
  0x20   :  { %2037 = vmatmul.msk.f32.vlgmr.msrb.gmra.mxu0 %vm36_vm1, %v2035_v11  ;;  %v2613_v11 = vld [vmem:[%s3187_s5 + $0x68] sm:$0xff] }
  0x21   :  { %712 = vmatpush.msrb.mxu1 %v624_v15  ;;  %2056 = vmatpush.msk.msrb.mxu0 %vm40_vm0, %v26_v4  ;;  %v2632_v15 = vld [vmem:[%s3187_s5 + $0x40] sm:$0xff] }
  0x23   :  { %2042 = vmatmul.msk.f32.vlgmr.msra.gmra.mxu2 %vm36_vm1, %v2040_v12  ;;  %713 = vmatpush.msrb.mxu1 %v623_v16  ;;  %v2619_v12 = vld [vmem:[%s3187_s5 + $0x58] sm:$0xff]  ;;  %v2637_v16 = vld [vmem:[%s3187_s5 + $0x48] sm:$0xff] }
  0x24   :  { %2061 = vmatpush.msk.msra.mxu2 %vm40_vm0, %v26_v4  ;;  %2054 = vmatmul.msk.f32.vlgmr.msra.gmra.mxu3 %vm36_vm1, %v2050_v19  ;;  %v643_v4 = vld [vmem:[%s3190_s3 + $0x108] sm:$0xff] }
  0x25   :  { %714 = vmatpush.msrb.mxu1 %v622_v17  ;;  %751 = vmatpush.msra.mxu3 %v657_v18  ;;  %v666_v17 = vld [vmem:[%s3190_s3 + $0x1c0] sm:$0xff]  ;;  %v2648_v18 = vld [vmem:[%s3187_s5 + $0x30] sm:$0xff] }
  0x26   :  { %2059 = vmatmul.msk.f32.vlgmr.msra.gmra.mxu1 %vm36_vm1, %v2055_v22 }
  0x27   :  { %715 = vmatpush.msrb.mxu1 %v621_v20  ;;  %752 = vmatpush.msra.mxu3 %v656_v21  ;;  %v665_v20 = vld [vmem:[%s3190_s3 + $0x1b8] sm:$0xff]  ;;  %v2663_v21 = vld [vmem:[%s3187_s5 + $0x20] sm:$0xff] }
  0x28   :  { %2047 = vmatmul.msk.f32.vlgmr.msra.gmra.mxu0 %vm36_vm1, %v2045_v13  ;;  %v667_v13 = vld [vmem:[%s3190_s3 + $0x1c8] sm:$0xff] }
  0x29   :  { %716 = vmatpush.msrb.mxu1 %v620_v23  ;;  %753 = vmatpush.msra.mxu3 %v655_v24  ;;  %v664_v23 = vld [vmem:[%s3190_s3 + $0x1b0] sm:$0xff] }
  0x2a   :  { %2070 = vmatpush.msk.msra.mxu0 %vm679_vm2, %v674_v25  ;;  %v2676_v24 = vld [vmem:[%s3187_s5 + $0x10] sm:$0xff]  ;;  %v2681_v25 = vld [vmem:[%s3187_s5 + $0x18] sm:$0xff] }
  0x2b   :  { %2052 = vmatmul.msk.f32.vlgmr.msrb.gmra.mxu2 %vm36_vm1, %v2050_v19  ;;  %717 = vmatpush.msrb.mxu1 %v619_v26  ;;  %v2653_v19 = vld [vmem:[%s3187_s5 + $0x38] sm:$0xff]  ;;  %v663_v26 = vld [vmem:[%s3190_s3 + $0x1a8] sm:$0xff] }
  0x2c   :  { %731 = vmatpush.msrb.mxu2 %v641_v27  ;;  %754 = vmatpush.msra.mxu3 %v654_v28  ;;  %v2695_v27 = vld [vmem:[%s3187_s5] sm:$0xff]  ;;  %v2700_v28 = vld [vmem:[%s3187_s5 + $0x8] sm:$0xff] }
  0x2d   :  { %718 = vmatpush.msrb.mxu1 %v618_v29  ;;  %698 = vmatpush.msra.mxu0 %v673_v30  ;;  %v662_v29 = vld [vmem:[%s3190_s3 + $0x1a0] sm:$0xff]  ;;  %v661_v30 = vld [vmem:[%s3190_s3 + $0x198] sm:$0xff] }
  0x2e   :  { %732 = vmatpush.msrb.mxu2 %v640_v31  ;;  %755 = vmatpush.msra.mxu3 %v653_v32  ;;  %v660_v31 = vld [vmem:[%s3190_s3 + $0x190] sm:$0xff]  ;;  %v659_v32 = vld [vmem:[%s3190_s3 + $0x188] sm:$0xff] }
  0x2f   :  { %719 = vmatpush.msrb.mxu1 %v617_v33  ;;  %2064 = vmatmul.msk.f32.vlgmr.msrb.gmra.mxu3 %vm36_vm1, %v2060_v34  ;;  %v658_v33 = vld [vmem:[%s3190_s3 + $0x180] sm:$0xff] }
  0x30   :  { %733 = vmatpush.msrb.mxu2 %v639_v35  ;;  %756 = vmatpush.msra.mxu3 %v652_v36 }
  0x31   :  { %720 = vmatpush.msrb.mxu1 %v616_v37  ;;  %2057 = vmatmul.msk.f32.vlgmr.msrb.gmra.mxu0 %vm36_vm1, %v2055_v22  ;;  %v2668_v22 = vld [vmem:[%s3187_s5 + $0x28] sm:$0xff] }
  0x32   :  { %734 = vmatpush.msrb.mxu2 %v638_v38  ;;  %757 = vmatpush.msra.mxu3 %v651_v39  ;;  %v2286_v39 = vmov 1.0  }
  0x33   :  { %721 = vmatpush.msrb.mxu1 %v615_v40  ;;  %2075 = vmatpush.msk.msrb.mxu0 %vm707_vm3, %v672_v41  ;;  %v2287_v41 = vmov 0.0   ;;  %vm807_vm3 = vcmask 523264  }
  0x34   :  { %735 = vmatpush.msrb.mxu2 %v637_v42  ;;  %758 = vmatpush.msra.mxu3 %v650_v43 }
  0x35   :  { %722 = vmatpush.msrb.mxu1 %v614_v44  ;;  %773 = vmatpush.msrb.mxu0 %v671_v45  ;;  %v2737_v44 = vld [vmem:[%s3187_s5 + $0x86] ss:$8 sm:$0x3] }
  0x36   :  { %736 = vmatpush.msrb.mxu2 %v636_v46  ;;  %759 = vmatpush.msra.mxu3 %v649_v47  ;;  %v2745_v45 = vperm.slane %v2737_v44, 1 }
  0x37   :  { %723 = vmatpush.msrb.mxu1 %v613_v48  ;;  %2062 = vmatmul.msk.f32.vlgmr.msra.gmra.mxu2 %vm36_vm1, %v2060_v34  ;;  %v584_v34 = vlaneseq }
  0x38   :  { %737 = vmatpush.msrb.mxu2 %v635_v49  ;;  %760 = vmatpush.msra.mxu3 %v648_v50 }
  0x39   :  { %724 = vmatpush.msrb.mxu1 %v612_v51  ;;  %774 = vmatpush.msrb.mxu0 %v670_v52  ;;  %v585_v35 = vand.u32 127, %v584_v34 }
  0x3a   :  { %738 = vmatpush.msrb.mxu2 %v634_v53  ;;  %761 = vmatpush.msra.mxu3 %v647_v54 }
  0x3b   :  { %725 = vmatpush.msrb.mxu1 %v611_v55  ;;  %775 = vmatpush.msrb.mxu0 %v669_v56  ;;  %v586_v36 = vadd.s32 128, %v585_v35  ;;  %v587_v37 = vadd.s32 256, %v585_v35  ;;  %v588_v43 = vadd.s32 384, %v585_v35 }
  0x3c   :  { %739 = vmatpush.msrb.mxu2 %v633_v57  ;;  %762 = vmatpush.msra.mxu3 %v646_v58 }
  0x3d   :  { %726 = vmatpush.msrb.mxu1 %v610_v59  ;;  %776 = vmatpush.msrb.mxu0 %v668_v60 }
  0x3e   :  { %740 = vmatpush.msrb.mxu2 %v632_v61  ;;  %763 = vmatpush.msra.mxu3 %v645_v62 }
  0x3f   :  { %819 = vmatpush.msra.mxu1 %v2566_v63  ;;  %777 = vmatpush.msrb.mxu0 %v667_v13 }
  0x40   :  { %741 = vmatpush.msrb.mxu2 %v631_v0  ;;  %764 = vmatpush.msra.mxu3 %v644_v1 }
  0x41   :  { %820 = vmatpush.msra.mxu1 %v2577_v2  ;;  %778 = vmatpush.msrb.mxu0 %v666_v17 }
  0x42   :  { %742 = vmatpush.msrb.mxu2 %v630_v3  ;;  %765 = vmatpush.msra.mxu3 %v643_v4 }
  0x43   :  { %821 = vmatpush.msra.mxu1 %v2589_v5  ;;  %779 = vmatpush.msrb.mxu0 %v665_v20 }
  0x44   :  { %743 = vmatpush.msrb.mxu2 %v629_v6  ;;  %766 = vmatpush.msra.mxu3 %v642_v14 }
  0x45   :  { %822 = vmatpush.msra.mxu1 %v2632_v15  ;;  %780 = vmatpush.msrb.mxu0 %v664_v23 }
  0x46   :  { %744 = vmatpush.msrb.mxu2 %v628_v7  ;;  %913 = vmatpush.msrb.mxu3 %v2566_v63 }
  0x47   :  { %823 = vmatpush.msra.mxu1 %v2648_v18  ;;  %781 = vmatpush.msrb.mxu0 %v663_v26 }
  0x48   :  { %745 = vmatpush.msrb.mxu2 %v627_v8  ;;  %914 = vmatpush.msrb.mxu3 %v2577_v2 }
  0x49   :  { %824 = vmatpush.msra.mxu1 %v2663_v21  ;;  %782 = vmatpush.msrb.mxu0 %v662_v29 }
  0x4a   :  { %746 = vmatpush.msrb.mxu2 %v626_v9  ;;  %915 = vmatpush.msrb.mxu3 %v2589_v5 }
  0x4b   :  { %825 = vmatpush.msra.mxu1 %v2676_v24  ;;  %783 = vmatpush.msrb.mxu0 %v661_v30 }
  0x4c   :  { %839 = vmatpush.msra.mxu2 %v2608_v10  ;;  %916 = vmatpush.msrb.mxu3 %v2632_v15 }
  0x4d   :  { %826 = vmatpush.msra.mxu1 %v2695_v27  ;;  %784 = vmatpush.msrb.mxu0 %v660_v31  ;;  %v2839_v31 = vperm.slane %v2737_v44, 0 }
  0x4e   :  { %840 = vmatpush.msra.mxu2 %v2613_v11  ;;  %917 = vmatpush.msrb.mxu3 %v2648_v18 }
  0x4f   :  { %785 = vmatpush.msrb.mxu0 %v659_v32 }
  0x50   :  { %841 = vmatpush.msra.mxu2 %v2619_v12  ;;  %918 = vmatpush.msrb.mxu3 %v2663_v21 }
  0x51   :  { %786 = vmatpush.msrb.mxu0 %v658_v33 }
  0x52   :  { %842 = vmatpush.msra.mxu2 %v2637_v16  ;;  %919 = vmatpush.msrb.mxu3 %v2676_v24 }
  0x54   :  { %843 = vmatpush.msra.mxu2 %v2653_v19  ;;  %920 = vmatpush.msrb.mxu3 %v2695_v27 }
  0x56   :  { %844 = vmatpush.msra.mxu2 %v2668_v22 }
  0x58   :  { %845 = vmatpush.msra.mxu2 %v2681_v25 }
  0x5a   :  { %846 = vmatpush.msra.mxu2 %v2700_v28 }
  0x74   :  { %v591_v38 = vpop.permute.xlu0 %590 }
  0x75   :  { %vm592_vm4 = vcmp.eq.s32.totalorder %v585_v35, %v591_v38  ;;  %vm593_vm5 = vcmp.eq.s32.totalorder %v586_v36, %v591_v38  ;;  %vm594_vm6 = vcmp.eq.s32.totalorder %v587_v37, %v591_v38  ;;  %vm595_vm9 = vcmp.eq.s32.totalorder %v588_v43, %v591_v38 }
  0x76   :  { %2072 = vmatmul.msk.f32.vlgmr.msrb.gmra.mxu1 %vm592_vm4, %v2286_v39  ;;  %2073 = vmatmul.msk.f32.vlgmr.msrb.gmra.mxu2 %vm593_vm5, %v2286_v39  ;;  %v2068_v48 = vsel %vm595_vm9, 1.0, %v2287_v41 }
  0x77   :  { %2074 = vmatmul.msk.f32.vlgmr.msra.gmra.mxu3 %vm594_vm6, %v2286_v39  ;;  %1007 = vmatpush.msrb.mxu1 %v2566_v63 }
  0x78   :  { %1027 = vmatpush.msrb.mxu2 %v2608_v10  ;;  %1101 = vmatpush.msra.mxu3 %v2566_v63 }
  0x79   :  { %1008 = vmatpush.msrb.mxu1 %v2577_v2 }
  0x7a   :  { %1028 = vmatpush.msrb.mxu2 %v2613_v11  ;;  %1102 = vmatpush.msra.mxu3 %v2577_v2 }
  0x7b   :  { %1009 = vmatpush.msrb.mxu1 %v2589_v5 }
  0x7c   :  { %v606_v40 = vpop.permute.xlu0 %605  ;;  %1029 = vmatpush.msrb.mxu2 %v2619_v12  ;;  %1103 = vmatpush.msra.mxu3 %v2589_v5 }
  0x7d   :  { %vm607_vm8 = vcmp.eq.s32.totalorder %v585_v35, %v606_v40  ;;  %1010 = vmatpush.msrb.mxu1 %v2632_v15 }
  0x7e   :  { %v2069_v42 = vsel %vm607_vm8, 1.0, %v2287_v41  ;;  %827 = vmatmul.f32.vlgmr.msra.gmra.mxu1 %v2287_v41  ;;  %847 = vmatmul.f32.vlgmr.msra.gmra.mxu2 %v2287_v41 }
  0x7f   :  { %2071 = vmatmul.msk.f32.vlgmr.msra.gmra.mxu0 %vm675_vm7, %v2069_v42  ;;  %1030 = vmatpush.msrb.mxu2 %v2637_v16 }
  0x80   :  { %933 = vmatpush.msra.mxu0 %v2608_v10  ;;  %1011 = vmatpush.msrb.mxu1 %v2648_v18 }
  0x81   :  { %1031 = vmatpush.msrb.mxu2 %v2653_v19  ;;  %1104 = vmatpush.msra.mxu3 %v2632_v15 }
  0x82   :  { %934 = vmatpush.msra.mxu0 %v2613_v11  ;;  %1012 = vmatpush.msrb.mxu1 %v2663_v21 }
  0x83   :  { %v174_v46 = vpop.f32.mrf.mxu1  ;;  %1032 = vmatpush.msrb.mxu2 %v2668_v22  ;;  %1105 = vmatpush.msra.mxu3 %v2648_v18 }
  0x84   :  { %v2752_v47 = vadd.f32 %v174_v46, %v2745_v45  ;;  %935 = vmatpush.msra.mxu0 %v2619_v12  ;;  %1013 = vmatpush.msrb.mxu1 %v2676_v24 }
  0x85   :  { %1033 = vmatpush.msrb.mxu2 %v2681_v25  ;;  %1106 = vmatpush.msra.mxu3 %v2663_v21  ;;  %v64_v4 = vpop.f32.mrf.mxu0 }
  0x86   :  { %936 = vmatpush.msra.mxu0 %v2637_v16  ;;  %1014 = vmatpush.msrb.mxu1 %v2695_v27  ;;  %v84_v1 = vpop.f32.mrf.mxu2  ;;  %v65_v32 = vadd.f32 %v64_v4, %v2839_v31 }
  0x87   :  { %2076 = vmatmul.msk.f32.vlgmr.msrb.gmra.mxu0 %vm703_vm10, %v2068_v48  ;;  %v2760_v49 = vpop.f32.mrf.mxu3  ;;  %1034 = vmatpush.msrb.mxu2 %v2700_v28  ;;  %v85_v40 = vadd.f32 %v84_v1, %v2745_v45 }
  0x88   :  { %937 = vmatpush.msra.mxu0 %v2653_v19  ;;  %1107 = vmatpush.msra.mxu3 %v2676_v24 }
  0x89   :  { %1195 = vmatpush.msra.mxu1 %v2566_v63  ;;  %1215 = vmatpush.msra.mxu2 %v2608_v10 }
  0x8a   :  { %938 = vmatpush.msra.mxu0 %v2668_v22  ;;  %1108 = vmatpush.msra.mxu3 %v2695_v27 }
  0x8b   :  { %v264_v50 = vpop.f32.mrf.mxu1  ;;  %1196 = vmatpush.msra.mxu1 %v2577_v2  ;;  %1216 = vmatpush.msra.mxu2 %v2613_v11 }
  0x8c   :  { %v2772_v51 = vadd.f32 %v264_v50, %v2745_v45  ;;  %939 = vmatpush.msra.mxu0 %v2681_v25 }
  0x8d   :  { %1197 = vmatpush.msra.mxu1 %v2589_v5  ;;  %1217 = vmatpush.msra.mxu2 %v2619_v12  ;;  %v2818_v7 = vpop.f32.mrf.mxu0 }
  0x8e   :  { %940 = vmatpush.msra.mxu0 %v2700_v28  ;;  %v2814_v3 = vpop.f32.mrf.mxu2 }
  0x8f   :  { %v219_v52 = vpop.f32.mrf.mxu3  ;;  %1198 = vmatpush.msra.mxu1 %v2632_v15  ;;  %1218 = vmatpush.msra.mxu2 %v2637_v16 }
  0x90   :  { %1121 = vmatpush.msrb.mxu0 %v2608_v10  ;;  %v2781_v53 = vadd.f32 %v219_v52, %v2745_v45 }
  0x91   :  { %1199 = vmatpush.msra.mxu1 %v2648_v18  ;;  %1219 = vmatpush.msra.mxu2 %v2653_v19 }
  0x92   :  { %1122 = vmatpush.msrb.mxu0 %v2613_v11 }
  0x93   :  { %v354_v54 = vpop.f32.mrf.mxu1  ;;  %1200 = vmatpush.msra.mxu1 %v2663_v21  ;;  %1220 = vmatpush.msra.mxu2 %v2668_v22 }
  0x94   :  { %1123 = vmatpush.msrb.mxu0 %v2619_v12  ;;  %v2790_v55 = vadd.f32 %v354_v54, %v2745_v45 }
  0x95   :  { %1201 = vmatpush.msra.mxu1 %v2676_v24  ;;  %1221 = vmatpush.msra.mxu2 %v2681_v25  ;;  %v2822_v9 = vpop.f32.mrf.mxu0 }
  0x96   :  { %1124 = vmatpush.msrb.mxu0 %v2637_v16  ;;  %v2816_v6 = vpop.f32.mrf.mxu2 }
  0x97   :  { %v309_v56 = vpop.f32.mrf.mxu3  ;;  %1202 = vmatpush.msra.mxu1 %v2695_v27  ;;  %1222 = vmatpush.msra.mxu2 %v2700_v28 }
  0x98   :  { %1125 = vmatpush.msrb.mxu0 %v2653_v19  ;;  %v2799_v57 = vadd.f32 %v309_v56, %v2745_v45 }
  0x9a   :  { %1126 = vmatpush.msrb.mxu0 %v2668_v22 }
  0x9b   :  { %v444_v58 = vpop.f32.mrf.mxu1 }
  0x9c   :  { %1127 = vmatpush.msrb.mxu0 %v2681_v25  ;;  %v2805_v59 = vadd.f32 %v444_v58, %v2745_v45 }
  0x9d   :  { %v2826_v14 = vpop.f32.mrf.mxu0 }
  0x9e   :  { %1128 = vmatpush.msrb.mxu0 %v2700_v28  ;;  %v2820_v8 = vpop.f32.mrf.mxu2 }
  0x9f   :  { %v399_v60 = vpop.f32.mrf.mxu3 }
  0xa0   :  { %v2809_v61 = vadd.f32 %v399_v60, %v2745_v45 }
  0xa3   :  { %v2832_v23 = vpop.f32.mrf.mxu1 }
  0xa5   :  { %v2830_v20 = vpop.f32.mrf.mxu0 }
  0xa6   :  { %v2824_v13 = vpop.f32.mrf.mxu2 }
  0xa7   :  { %v489_v62 = vpop.f32.mrf.mxu3 }
  0xa8   :  { %v2812_v0 = vadd.f32 %v489_v62, %v2745_v45 }
  0xae   :  { %v2828_v17 = vpop.f32.mrf.mxu2  ;;  %v2836_v29 = vpop.f32.mrf.mxu0 }
  0xba   :  { %v2834_v26 = vpop.f32.mrf.mxu2 }
  0xf3   :  { %v728_v30 = vpop.f32.mrf.mxu1 }
  0xf9   :  { %v748_v33 = vpop.f32.mrf.mxu2 }
  0xfb   :  { %v828_v34 = vpop.f32.mrf.mxu1 }
  0xfc   :  { %v851_v35 = vadd.f32 %v828_v34, %v65_v32  ;;  %v700_v36 = vpop.f32.mrf.mxu0 }
  0xfd   :  { %v729_v37 = vadd.f32 %v728_v30, %v700_v36 }
  0xfe   :  { %v2077_v38 = vmul.f32 -1.442695, %v851_v35 }
  0xff   :  { %v2842_v39 = vadd.f32 %v748_v33, %v729_v37 }
 0x100   :  { %2145 = vpow2.f32 %v2077_v38 }
 0x101   :  { %v848_v41 = vpop.f32.mrf.mxu2 }
 0x102   :  { %v852_v42 = vadd.f32 %v848_v41, %v85_v40 }
 0x104   :  { %v2078_v43 = vmul.f32 -1.442695, %v852_v42 }
 0x106   :  { %v2146_v46 = vpop.eup %2145  ;;  %2147 = vpow2.f32 %v2078_v43 }
 0x107   :  { %v859_v44 = vadd.f32 1.0, %v2146_v46 }
 0x109   :  { %2149 = vrcp.f32 %v859_v44  ;;  %vm866_vm12 = vweird.f32 %v859_v44  ;;  %v872_v35 = vand.u32 2147483648, %v859_v44  ;;  %v870_v37 = vand.u32 2147483647, %v859_v44 }
 0x10b   :  { %v873_v43 = vor.u32 1.1754944e-38, %v872_v35  ;;  %vm871_vm2 = vcmp.eq.f32.partialorder %v870_v37, 8.507059e+37 }
 0x10c   :  { %v2148_v48 = vpop.eup %2147 }
 0x10d   :  { %v860_v50 = vadd.f32 1.0, %v2148_v48 }
 0x10f   :  { %v2150_v52 = vpop.eup %2149  ;;  %2151 = vrcp.f32 %v860_v50  ;;  %v887_v30 = vand.u32 2147483648, %v860_v50  ;;  %v885_v32 = vand.u32 2147483647, %v860_v50  ;;  %vm881_vm14 = vweird.f32 %v860_v50 }
 0x110   :  { %v862_v54 = vmul.f32 %v2150_v52, %v859_v44  ;;  %vm867_vm13 = vweird.f32 %v2150_v52 }
 0x111   :  { %v888_v36 = vor.u32 1.1754944e-38, %v887_v30  ;;  %vm886_vm0 = vcmp.eq.f32.partialorder %v885_v32, 8.507059e+37  ;;  %vm868_vm1 = vmor %vm866_vm12, %vm867_vm13  ;;  %v130_v30 = vadd.f32 %v2760_v49, %v2745_v45 }
 0x112   :  { %v863_v56 = vsub.f32 1.0, %v862_v54 }
 0x114   :  { %v864_v62 = vmul.f32 %v2150_v52, %v863_v56 }
 0x115   :  { %v2152_v58 = vpop.eup %2151 }
 0x116   :  { %v877_v60 = vmul.f32 %v2152_v58, %v860_v50  ;;  %vm882_vm11 = vweird.f32 %v2152_v58  ;;  %v865_v33 = vadd.f32 %v2150_v52, %v864_v62  ;;  %v2869_v62 = vpop.f32.mrf.mxu0 }
 0x117   :  { %vm883_vm15 = vmor %vm881_vm14, %vm882_vm11 }
 0x118   :  { %v878_v4 = vsub.f32 1.0, %v877_v60  ;;  %v869_v41 = vsel %vm868_vm1, %v2150_v52, %v865_v33  ;;  %v2867_v52 = vpop.f32.mrf.mxu3 }
 0x119   :  { %v874_v48 = vsel %vm871_vm2, %v873_v43, %v869_v41 }
 0x11a   :  { %v879_v1 = vmul.f32 %v2152_v58, %v878_v4  ;;  %v893_v56 = vmul.f32 0.0, %v874_v48 }
 0x11c   :  { %v880_v34 = vadd.f32 %v2152_v58, %v879_v1 }
 0x11e   :  { %v884_v38 = vsel %vm883_vm15, %v2152_v58, %v880_v34  ;;  %v110_v34 = vadd.f32 %v2814_v3, %v2839_v31 }
 0x11f   :  { %v889_v40 = vsel %vm886_vm0, %v888_v36, %v884_v38 }
 0x120   :  { %v891_v42 = vmul.f32 2.0, %v889_v40  ;;  %v2871_v4 = vpop.f32.mrf.mxu3 }
 0x122   :  { %v2079_v46 = vadd.f32 -1.0, %v891_v42 }
 0x124   :  { %v894_v54 = vmul.f32 %v2079_v46, %v874_v48 }
 0x126   :  { %896 = vrot.lane.b32.xlu1 %v894_v54, %s2288_s1 }
 0x198   :  { %v897_v50 = vpop.permute.xlu1 %896 }
 0x199   :  { %v2846_v60 = vadd.f32 %v897_v50, %v893_v56 }
 0x19b   :  { %2153 = vtanh.f32 %v2846_v60 }
 0x1a1   :  { %v2154_v44 = vpop.eup %2153 }
 0x1a2   :  { %v901_v58 = vmul.f32 %v2154_v44, %v889_v40 }
 0x1a4   :  { %2080 = vmatmul.msk.f32.vlgmr.msrb.gmra.mxu3 %vm807_vm3, %v901_v58  ;;  %2081 = vmatmul.msk.f32.vlgmr.msra.gmra.mxu0 %vm807_vm3, %v901_v58 }
 0x1a5   :  { %1289 = vmatpush.msrb.mxu3 %v2566_v63  ;;  %1309 = vmatpush.msra.mxu0 %v2608_v10 }
 0x1a7   :  { %1290 = vmatpush.msrb.mxu3 %v2577_v2  ;;  %1310 = vmatpush.msra.mxu0 %v2613_v11 }
 0x1a9   :  { %1291 = vmatpush.msrb.mxu3 %v2589_v5  ;;  %1311 = vmatpush.msra.mxu0 %v2619_v12 }
 0x1ab   :  { %1292 = vmatpush.msrb.mxu3 %v2632_v15  ;;  %1312 = vmatpush.msra.mxu0 %v2637_v16 }
 0x1ad   :  { %1293 = vmatpush.msrb.mxu3 %v2648_v18  ;;  %1313 = vmatpush.msra.mxu0 %v2653_v19 }
 0x1af   :  { %1294 = vmatpush.msrb.mxu3 %v2663_v21  ;;  %1314 = vmatpush.msra.mxu0 %v2668_v22 }
 0x1b1   :  { %1295 = vmatpush.msrb.mxu3 %v2676_v24  ;;  %1315 = vmatpush.msra.mxu0 %v2681_v25 }
 0x1b3   :  { %1296 = vmatpush.msrb.mxu3 %v2695_v27  ;;  %1316 = vmatpush.msra.mxu0 %v2700_v28 }
 0x221   :  { %v942_v1 = vpop.f32.mrf.mxu0 }
 0x222   :  { %v946_v32 = vadd.f32 %v942_v1, %v130_v30 }
 0x224   :  { %v2083_v33 = vmul.f32 -1.442695, %v946_v32 }
 0x226   :  { %2155 = vpow2.f32 %v2083_v33 }
 0x227   :  { %v922_v35 = vpop.f32.mrf.mxu3 }
 0x228   :  { %v945_v36 = vadd.f32 %v922_v35, %v110_v34 }
 0x22a   :  { %v2082_v37 = vmul.f32 -1.442695, %v945_v36 }
 0x22c   :  { %v2156_v38 = vpop.eup %2155  ;;  %2157 = vpow2.f32 %v2082_v37 }
 0x22d   :  { %v954_v40 = vadd.f32 1.0, %v2156_v38 }
 0x22f   :  { %2159 = vrcp.f32 %v954_v40  ;;  %v981_v48 = vand.u32 2147483648, %v954_v40  ;;  %v979_v56 = vand.u32 2147483647, %v954_v40  ;;  %vm975_vm5 = vweird.f32 %v954_v40 }
 0x231   :  { %v982_v58 = vor.u32 1.1754944e-38, %v981_v48  ;;  %vm980_vm7 = vcmp.eq.f32.partialorder %v979_v56, 8.507059e+37 }
 0x232   :  { %v2158_v41 = vpop.eup %2157 }
 0x233   :  { %v953_v42 = vadd.f32 1.0, %v2158_v41 }
 0x235   :  { %v2160_v43 = vpop.eup %2159  ;;  %2161 = vrcp.f32 %v953_v42  ;;  %v966_v32 = vand.u32 2147483648, %v953_v42  ;;  %v964_v35 = vand.u32 2147483647, %v953_v42  ;;  %vm960_vm9 = vweird.f32 %v953_v42 }
 0x236   :  { %v971_v46 = vmul.f32 %v2160_v43, %v954_v40  ;;  %vm976_vm4 = vweird.f32 %v2160_v43 }
 0x237   :  { %vm977_vm6 = vmor %vm975_vm5, %vm976_vm4  ;;  %v967_v38 = vor.u32 1.1754944e-38, %v966_v32  ;;  %vm965_vm11 = vcmp.eq.f32.partialorder %v964_v35, 8.507059e+37 }
 0x238   :  { %v972_v49 = vsub.f32 1.0, %v971_v46 }
 0x23a   :  { %v973_v54 = vmul.f32 %v2160_v43, %v972_v49 }
 0x23b   :  { %v2162_v50 = vpop.eup %2161 }
 0x23c   :  { %v956_v3 = vmul.f32 %v2162_v50, %v953_v42  ;;  %v974_v44 = vadd.f32 %v2160_v43, %v973_v54  ;;  %vm961_vm8 = vweird.f32 %v2162_v50 }
 0x23d   :  { %vm962_vm10 = vmor %vm960_vm9, %vm961_vm8 }
 0x23e   :  { %v957_v30 = vsub.f32 1.0, %v956_v3  ;;  %v978_v1 = vsel %vm977_vm6, %v2160_v43, %v974_v44 }
 0x23f   :  { %v983_v33 = vsel %vm980_vm7, %v982_v58, %v978_v1 }
 0x240   :  { %v958_v34 = vmul.f32 %v2162_v50, %v957_v30  ;;  %v985_v36 = vmul.f32 2.0, %v983_v33 }
 0x242   :  { %v959_v37 = vadd.f32 %v2162_v50, %v958_v34  ;;  %v2084_v46 = vadd.f32 -1.0, %v985_v36 }
 0x244   :  { %v963_v41 = vsel %vm962_vm10, %v2162_v50, %v959_v37 }
 0x245   :  { %v968_v49 = vsel %vm965_vm11, %v967_v38, %v963_v41 }
 0x246   :  { %v988_v40 = vmul.f32 %v2084_v46, %v968_v49  ;;  %v987_v43 = vmul.f32 %v968_v49, %v2846_v60  ;;  %v155_v60 = vadd.f32 %v2818_v7, %v2839_v31 }
 0x248   :  { %990 = vrot.lane.b32.xlu1 %v988_v40, %s2288_s1 }
 0x2ba   :  { %v991_v48 = vpop.permute.xlu1 %990 }
 0x2bb   :  { %v2879_v54 = vadd.f32 %v991_v48, %v987_v43 }
 0x2bd   :  { %2163 = vtanh.f32 %v2879_v54 }
 0x2c3   :  { %v2164_v56 = vpop.eup %2163 }
 0x2c4   :  { %v995_v3 = vmul.f32 %v2164_v56, %v983_v33 }
 0x2c6   :  { %2085 = vmatmul.msk.f32.vlgmr.msrb.gmra.mxu1 %vm807_vm3, %v995_v3  ;;  %2086 = vmatmul.msk.f32.vlgmr.msrb.gmra.mxu2 %vm807_vm3, %v995_v3 }
 0x2c7   :  { %1383 = vmatpush.msrb.mxu1 %v2566_v63  ;;  %1403 = vmatpush.msrb.mxu2 %v2608_v10 }
 0x2c9   :  { %1384 = vmatpush.msrb.mxu1 %v2577_v2  ;;  %1404 = vmatpush.msrb.mxu2 %v2613_v11 }
 0x2cb   :  { %1385 = vmatpush.msrb.mxu1 %v2589_v5  ;;  %1405 = vmatpush.msrb.mxu2 %v2619_v12 }
 0x2cd   :  { %1386 = vmatpush.msrb.mxu1 %v2632_v15  ;;  %1406 = vmatpush.msrb.mxu2 %v2637_v16 }
 0x2cf   :  { %1387 = vmatpush.msrb.mxu1 %v2648_v18  ;;  %1407 = vmatpush.msrb.mxu2 %v2653_v19 }
 0x2d1   :  { %1388 = vmatpush.msrb.mxu1 %v2663_v21  ;;  %1408 = vmatpush.msrb.mxu2 %v2668_v22 }
 0x2d3   :  { %1389 = vmatpush.msrb.mxu1 %v2676_v24  ;;  %1409 = vmatpush.msrb.mxu2 %v2681_v25 }
 0x2d5   :  { %1390 = vmatpush.msrb.mxu1 %v2695_v27  ;;  %1410 = vmatpush.msrb.mxu2 %v2700_v28 }
 0x343   :  { %v1016_v42 = vpop.f32.mrf.mxu1 }
 0x344   :  { %v1039_v50 = vadd.f32 %v1016_v42, %v155_v60 }
 0x346   :  { %v2087_v44 = vmul.f32 -1.442695, %v1039_v50 }
 0x348   :  { %2165 = vpow2.f32 %v2087_v44 }
 0x349   :  { %v1036_v58 = vpop.f32.mrf.mxu2 }
 0x34a   :  { %v1040_v30 = vadd.f32 %v1036_v58, %v2752_v47 }
 0x34c   :  { %v2088_v1 = vmul.f32 -1.442695, %v1040_v30 }
 0x34e   :  { %v2166_v32 = vpop.eup %2165  ;;  %2167 = vpow2.f32 %v2088_v1 }
 0x34f   :  { %v1047_v33 = vadd.f32 1.0, %v2166_v32 }
 0x351   :  { %2169 = vrcp.f32 %v1047_v33  ;;  %v1060_v3 = vand.u32 2147483648, %v1047_v33  ;;  %vm1054_vm0 = vweird.f32 %v1047_v33  ;;  %v1058_v42 = vand.u32 2147483647, %v1047_v33 }
 0x353   :  { %v1061_v1 = vor.u32 1.1754944e-38, %v1060_v3  ;;  %vm1059_vm4 = vcmp.eq.f32.partialorder %v1058_v42, 8.507059e+37 }
 0x354   :  { %v2168_v34 = vpop.eup %2167 }
 0x355   :  { %v1048_v35 = vadd.f32 1.0, %v2168_v34 }
 0x357   :  { %v2170_v36 = vpop.eup %2169  ;;  %2171 = vrcp.f32 %v1048_v35  ;;  %v1075_v40 = vand.u32 2147483648, %v1048_v35  ;;  %v1073_v48 = vand.u32 2147483647, %v1048_v35  ;;  %vm1069_vm14 = vweird.f32 %v1048_v35 }
 0x358   :  { %v1050_v37 = vmul.f32 %v2170_v36, %v1047_v33  ;;  %vm1055_vm13 = vweird.f32 %v2170_v36 }
 0x359   :  { %v1076_v60 = vor.u32 1.1754944e-38, %v1075_v40  ;;  %vm1074_vm1 = vcmp.eq.f32.partialorder %v1073_v48, 8.507059e+37  ;;  %vm1056_vm2 = vmor %vm1054_vm0, %vm1055_vm13 }
 0x35a   :  { %v1051_v38 = vsub.f32 1.0, %v1050_v37 }
 0x35c   :  { %v1052_v46 = vmul.f32 %v2170_v36, %v1051_v38 }
 0x35d   :  { %v2172_v41 = vpop.eup %2171 }
 0x35e   :  { %v1065_v7 = vmul.f32 %v2172_v41, %v1048_v35  ;;  %vm1070_vm12 = vweird.f32 %v2172_v41  ;;  %v1053_v47 = vadd.f32 %v2170_v36, %v1052_v46 }
 0x35f   :  { %vm1071_vm15 = vmor %vm1069_vm14, %vm1070_vm12 }
 0x360   :  { %v1066_v49 = vsub.f32 1.0, %v1065_v7  ;;  %v1057_v58 = vsel %vm1056_vm2, %v2170_v36, %v1053_v47 }
 0x361   :  { %v1062_v34 = vsel %vm1059_vm4, %v1061_v1, %v1057_v58 }
 0x362   :  { %v1067_v43 = vmul.f32 %v2172_v41, %v1066_v49  ;;  %v1081_v35 = vmul.f32 %v1062_v34, %v2879_v54  ;;  %v200_v49 = vadd.f32 %v2816_v6, %v2839_v31 }
 0x364   :  { %v1068_v56 = vadd.f32 %v2172_v41, %v1067_v43 }
 0x366   :  { %v1072_v50 = vsel %vm1071_vm15, %v2172_v41, %v1068_v56 }
 0x367   :  { %v1077_v44 = vsel %vm1074_vm1, %v1076_v60, %v1072_v50 }
 0x368   :  { %v1079_v30 = vmul.f32 2.0, %v1077_v44 }
 0x36a   :  { %v2089_v32 = vadd.f32 -1.0, %v1079_v30 }
 0x36c   :  { %v1082_v37 = vmul.f32 %v2089_v32, %v1062_v34 }
 0x36e   :  { %1084 = vrot.lane.b32.xlu2 %v1082_v37, %s2288_s1 }
 0x3c8   :  { %v1085_v38 = vpop.permute.xlu2 %1084 }
 0x3c9   :  { %v2905_v7 = vadd.f32 %v1085_v38, %v1081_v35 }
 0x3cb   :  { %2173 = vtanh.f32 %v2905_v7 }
 0x3d1   :  { %v2174_v33 = vpop.eup %2173 }
 0x3d2   :  { %v1089_v41 = vmul.f32 %v2174_v33, %v1077_v44 }
 0x3d4   :  { %2090 = vmatmul.msk.f32.vlgmr.msra.gmra.mxu3 %vm807_vm3, %v1089_v41  ;;  %2091 = vmatmul.msk.f32.vlgmr.msrb.gmra.mxu0 %vm807_vm3, %v1089_v41 }
 0x3d5   :  { %1477 = vmatpush.msra.mxu3 %v2566_v63  ;;  %1497 = vmatpush.msrb.mxu0 %v2608_v10 }
 0x3d7   :  { %1478 = vmatpush.msra.mxu3 %v2577_v2  ;;  %1498 = vmatpush.msrb.mxu0 %v2613_v11 }
 0x3d9   :  { %1479 = vmatpush.msra.mxu3 %v2589_v5  ;;  %1499 = vmatpush.msrb.mxu0 %v2619_v12 }
 0x3db   :  { %1480 = vmatpush.msra.mxu3 %v2632_v15  ;;  %1500 = vmatpush.msrb.mxu0 %v2637_v16 }
 0x3dd   :  { %1481 = vmatpush.msra.mxu3 %v2648_v18  ;;  %1501 = vmatpush.msrb.mxu0 %v2653_v19 }
 0x3df   :  { %1482 = vmatpush.msra.mxu3 %v2663_v21  ;;  %1502 = vmatpush.msrb.mxu0 %v2668_v22 }
 0x3e1   :  { %1483 = vmatpush.msra.mxu3 %v2676_v24  ;;  %1503 = vmatpush.msrb.mxu0 %v2681_v25 }
 0x3e3   :  { %1484 = vmatpush.msra.mxu3 %v2695_v27  ;;  %1504 = vmatpush.msrb.mxu0 %v2700_v28 }
 0x451   :  { %v1130_v54 = vpop.f32.mrf.mxu0 }
 0x452   :  { %v1134_v36 = vadd.f32 %v1130_v54, %v2781_v53 }
 0x454   :  { %v2093_v46 = vmul.f32 -1.442695, %v1134_v36 }
 0x456   :  { %2175 = vpow2.f32 %v2093_v46 }
 0x457   :  { %v1110_v40 = vpop.f32.mrf.mxu3 }
 0x458   :  { %v1133_v43 = vadd.f32 %v1110_v40, %v200_v49 }
 0x45a   :  { %v2092_v48 = vmul.f32 -1.442695, %v1133_v43 }
 0x45c   :  { %v2176_v47 = vpop.eup %2175  ;;  %2177 = vpow2.f32 %v2092_v48 }
 0x45d   :  { %v1142_v56 = vadd.f32 1.0, %v2176_v47 }
 0x45f   :  { %2179 = vrcp.f32 %v1142_v56  ;;  %v1169_v58 = vand.u32 2147483648, %v1142_v56  ;;  %v1167_v30 = vand.u32 2147483647, %v1142_v56  ;;  %vm1163_vm6 = vweird.f32 %v1142_v56 }
 0x461   :  { %v1170_v34 = vor.u32 1.1754944e-38, %v1169_v58  ;;  %vm1168_vm8 = vcmp.eq.f32.partialorder %v1167_v30, 8.507059e+37 }
 0x462   :  { %v2178_v3 = vpop.eup %2177 }
 0x463   :  { %v1141_v60 = vadd.f32 1.0, %v2178_v3 }
 0x465   :  { %v2180_v42 = vpop.eup %2179  ;;  %2181 = vrcp.f32 %v1141_v60  ;;  %v1154_v38 = vand.u32 2147483648, %v1141_v60  ;;  %v1152_v54 = vand.u32 2147483647, %v1141_v60  ;;  %vm1148_vm10 = vweird.f32 %v1141_v60 }
 0x466   :  { %v1159_v50 = vmul.f32 %v2180_v42, %v1142_v56  ;;  %vm1164_vm5 = vweird.f32 %v2180_v42 }
 0x467   :  { %vm1165_vm7 = vmor %vm1163_vm6, %vm1164_vm5  ;;  %v1155_v49 = vor.u32 1.1754944e-38, %v1154_v38  ;;  %vm1153_vm12 = vcmp.eq.f32.partialorder %v1152_v54, 8.507059e+37 }
 0x468   :  { %v1160_v44 = vsub.f32 1.0, %v1159_v50 }
 0x46a   :  { %v1161_v53 = vmul.f32 %v2180_v42, %v1160_v44 }
 0x46b   :  { %v2182_v1 = vpop.eup %2181 }
 0x46c   :  { %v1144_v6 = vmul.f32 %v2182_v1, %v1141_v60  ;;  %v1162_v32 = vadd.f32 %v2180_v42, %v1161_v53  ;;  %vm1149_vm9 = vweird.f32 %v2182_v1 }
 0x46d   :  { %vm1150_vm11 = vmor %vm1148_vm10, %vm1149_vm9 }
 0x46e   :  { %v1145_v37 = vsub.f32 1.0, %v1144_v6  ;;  %v1166_v35 = vsel %vm1165_vm7, %v2180_v42, %v1162_v32 }
 0x46f   :  { %v1171_v33 = vsel %vm1168_vm8, %v1170_v34, %v1166_v35 }
 0x470   :  { %v1146_v41 = vmul.f32 %v2182_v1, %v1145_v37  ;;  %v1173_v36 = vmul.f32 2.0, %v1171_v33 }
 0x472   :  { %v1147_v46 = vadd.f32 %v2182_v1, %v1146_v41  ;;  %v2094_v43 = vadd.f32 -1.0, %v1173_v36 }
 0x474   :  { %v1151_v40 = vsel %vm1150_vm11, %v2182_v1, %v1147_v46 }
 0x475   :  { %v1156_v48 = vsel %vm1153_vm12, %v1155_v49, %v1151_v40 }
 0x476   :  { %v1176_v47 = vmul.f32 %v2094_v43, %v1156_v48  ;;  %v1175_v56 = vmul.f32 %v1156_v48, %v2905_v7 }
 0x478   :  { %1178 = vrot.lane.b32.xlu2 %v1176_v47, %s2288_s1 }
 0x4d2   :  { %v1179_v3 = vpop.permute.xlu2 %1178 }
 0x4d3   :  { %v2931_v42 = vadd.f32 %v1179_v3, %v1175_v56 }
 0x4d5   :  { %2183 = vtanh.f32 %v2931_v42 }
 0x4db   :  { %v2184_v50 = vpop.eup %2183 }
 0x4dc   :  { %v1183_v44 = vmul.f32 %v2184_v50, %v1171_v33 }
 0x4de   :  { %2095 = vmatmul.msk.f32.vlgmr.msra.gmra.mxu1 %vm807_vm3, %v1183_v44  ;;  %2096 = vmatmul.msk.f32.vlgmr.msra.gmra.mxu2 %vm807_vm3, %v1183_v44 }
 0x4df   :  { %1571 = vmatpush.msra.mxu1 %v2566_v63  ;;  %1591 = vmatpush.msra.mxu2 %v2608_v10  ;;  %v245_v63 = vadd.f32 %v2822_v9, %v2839_v31 }
 0x4e1   :  { %1572 = vmatpush.msra.mxu1 %v2577_v2  ;;  %1592 = vmatpush.msra.mxu2 %v2613_v11 }
 0x4e3   :  { %1573 = vmatpush.msra.mxu1 %v2589_v5  ;;  %1593 = vmatpush.msra.mxu2 %v2619_v12 }
 0x4e5   :  { %1574 = vmatpush.msra.mxu1 %v2632_v15  ;;  %1594 = vmatpush.msra.mxu2 %v2637_v16 }
 0x4e7   :  { %1575 = vmatpush.msra.mxu1 %v2648_v18  ;;  %1595 = vmatpush.msra.mxu2 %v2653_v19 }
 0x4e9   :  { %1576 = vmatpush.msra.mxu1 %v2663_v21  ;;  %1596 = vmatpush.msra.mxu2 %v2668_v22 }
 0x4eb   :  { %1577 = vmatpush.msra.mxu1 %v2676_v24  ;;  %1597 = vmatpush.msra.mxu2 %v2681_v25 }
 0x4ed   :  { %1578 = vmatpush.msra.mxu1 %v2695_v27  ;;  %1598 = vmatpush.msra.mxu2 %v2700_v28 }
 0x55b   :  { %v1204_v2 = vpop.f32.mrf.mxu1 }
 0x55c   :  { %v1227_v5 = vadd.f32 %v1204_v2, %v245_v63  ;;  %v2965_v2 = vld [vmem:[%s3187_s5 + $0x70] sm:$0xff] }
 0x55e   :  { %v2097_v10 = vmul.f32 -1.442695, %v1227_v5  ;;  %v2977_v5 = vld [vmem:[%s3187_s5 + $0x60] sm:$0xff] }
 0x560   :  { %2185 = vpow2.f32 %v2097_v10  ;;  %v2983_v10 = vld [vmem:[%s3187_s5 + $0x68] sm:$0xff] }
 0x561   :  { %v1224_v11 = vpop.f32.mrf.mxu2 }
 0x562   :  { %v1228_v12 = vadd.f32 %v1224_v11, %v2772_v51  ;;  %v2989_v11 = vld [vmem:[%s3187_s5 + $0x50] sm:$0xff] }
 0x564   :  { %v2098_v15 = vmul.f32 -1.442695, %v1228_v12  ;;  %v2995_v12 = vld [vmem:[%s3187_s5 + $0x58] sm:$0xff] }
 0x566   :  { %v2186_v16 = vpop.eup %2185  ;;  %2187 = vpow2.f32 %v2098_v15  ;;  %v3001_v15 = vld [vmem:[%s3187_s5 + $0x40] sm:$0xff] }
 0x567   :  { %v1235_v18 = vadd.f32 1.0, %v2186_v16  ;;  %v3007_v16 = vld [vmem:[%s3187_s5 + $0x48] sm:$0xff] }
 0x569   :  { %2189 = vrcp.f32 %v1235_v18  ;;  %v1248_v38 = vand.u32 2147483648, %v1235_v18  ;;  %vm1242_vm1 = vweird.f32 %v1235_v18  ;;  %v1246_v41 = vand.u32 2147483647, %v1235_v18 }
 0x56b   :  { %v1249_v40 = vor.u32 1.1754944e-38, %v1248_v38  ;;  %vm1247_vm5 = vcmp.eq.f32.partialorder %v1246_v41, 8.507059e+37 }
 0x56c   :  { %v2188_v19 = vpop.eup %2187 }
 0x56d   :  { %v1236_v7 = vadd.f32 1.0, %v2188_v19  ;;  %v3019_v19 = vld [vmem:[%s3187_s5 + $0x38] sm:$0xff] }
 0x56f   :  { %v2190_v60 = vpop.eup %2189  ;;  %2191 = vrcp.f32 %v1236_v7  ;;  %v1263_v32 = vand.u32 2147483648, %v1236_v7  ;;  %v1261_v37 = vand.u32 2147483647, %v1236_v7  ;;  %vm1257_vm15 = vweird.f32 %v1236_v7 }
 0x570   :  { %v1238_v58 = vmul.f32 %v2190_v60, %v1235_v18  ;;  %vm1243_vm14 = vweird.f32 %v2190_v60  ;;  %v3013_v18 = vld [vmem:[%s3187_s5 + $0x30] sm:$0xff] }
 0x571   :  { %v1264_v33 = vor.u32 1.1754944e-38, %v1263_v32  ;;  %vm1262_vm2 = vcmp.eq.f32.partialorder %v1261_v37, 8.507059e+37  ;;  %vm1244_vm4 = vmor %vm1242_vm1, %vm1243_vm14 }
 0x572   :  { %v1239_v53 = vsub.f32 1.0, %v1238_v58 }
 0x574   :  { %v1240_v6 = vmul.f32 %v2190_v60, %v1239_v53  ;;  %v290_v53 = vadd.f32 %v2820_v8, %v2839_v31 }
 0x575   :  { %v2192_v30 = vpop.eup %2191 }
 0x576   :  { %v1253_v9 = vmul.f32 %v2192_v30, %v1236_v7  ;;  %vm1258_vm13 = vweird.f32 %v2192_v30  ;;  %v1241_v51 = vadd.f32 %v2190_v60, %v1240_v6 }
 0x577   :  { %vm1259_vm0 = vmor %vm1257_vm15, %vm1258_vm13 }
 0x578   :  { %v1254_v1 = vsub.f32 1.0, %v1253_v9  ;;  %v1245_v46 = vsel %vm1244_vm4, %v2190_v60, %v1241_v51 }
 0x579   :  { %v1250_v48 = vsel %vm1247_vm5, %v1249_v40, %v1245_v46 }
 0x57a   :  { %v1255_v34 = vmul.f32 %v2192_v30, %v1254_v1  ;;  %v1269_v56 = vmul.f32 %v1250_v48, %v2931_v42  ;;  %v2971_v42 = vld [vmem:[%s3187_s5 + $0x78] sm:$0xff] }
 0x57c   :  { %v1256_v35 = vadd.f32 %v2192_v30, %v1255_v34 }
 0x57e   :  { %v1260_v54 = vsel %vm1259_vm0, %v2192_v30, %v1256_v35 }
 0x57f   :  { %v1265_v36 = vsel %vm1262_vm2, %v1264_v33, %v1260_v54 }
 0x580   :  { %v1267_v49 = vmul.f32 2.0, %v1265_v36 }
 0x582   :  { %v2099_v43 = vadd.f32 -1.0, %v1267_v49 }
 0x584   :  { %v1270_v47 = vmul.f32 %v2099_v43, %v1250_v48 }
 0x586   :  { %1272 = vrot.lane.b32.xlu0 %v1270_v47, %s2288_s1 }
 0x5f8   :  { %v1273_v3 = vpop.permute.xlu0 %1272 }
 0x5f9   :  { %v2957_v50 = vadd.f32 %v1273_v3, %v1269_v56 }
 0x5fb   :  { %2193 = vtanh.f32 %v2957_v50 }
 0x601   :  { %v2194_v44 = vpop.eup %2193 }
 0x602   :  { %v1277_v63 = vmul.f32 %v2194_v44, %v1265_v36 }
 0x604   :  { %2100 = vmatmul.msk.f32.vlgmr.msrb.gmra.mxu3 %vm807_vm3, %v1277_v63  ;;  %2101 = vmatmul.msk.f32.vlgmr.msra.gmra.mxu0 %vm807_vm3, %v1277_v63 }
 0x605   :  { %1665 = vmatpush.msrb.mxu3 %v2965_v2  ;;  %1685 = vmatpush.msra.mxu0 %v2971_v42 }
 0x607   :  { %1666 = vmatpush.msrb.mxu3 %v2977_v5  ;;  %1686 = vmatpush.msra.mxu0 %v2983_v10 }
 0x609   :  { %1667 = vmatpush.msrb.mxu3 %v2989_v11  ;;  %1687 = vmatpush.msra.mxu0 %v2995_v12 }
 0x60b   :  { %1668 = vmatpush.msrb.mxu3 %v3001_v15  ;;  %1688 = vmatpush.msra.mxu0 %v3007_v16 }
 0x60d   :  { %1669 = vmatpush.msrb.mxu3 %v3013_v18  ;;  %1689 = vmatpush.msra.mxu0 %v3019_v19 }
 0x60f   :  { %1670 = vmatpush.msrb.mxu3 %v2663_v21  ;;  %1690 = vmatpush.msra.mxu0 %v2668_v22 }
 0x611   :  { %1671 = vmatpush.msrb.mxu3 %v2676_v24  ;;  %1691 = vmatpush.msra.mxu0 %v2681_v25 }
 0x613   :  { %1672 = vmatpush.msrb.mxu3 %v2695_v27  ;;  %1692 = vmatpush.msra.mxu0 %v2700_v28 }
 0x681   :  { %v1318_v7 = vpop.f32.mrf.mxu0 }
 0x682   :  { %v1322_v60 = vadd.f32 %v1318_v7, %v2799_v57 }
 0x684   :  { %v2103_v58 = vmul.f32 -1.442695, %v1322_v60 }
 0x686   :  { %2195 = vpow2.f32 %v2103_v58 }
 0x687   :  { %v1298_v30 = vpop.f32.mrf.mxu3 }
 0x688   :  { %v1321_v21 = vadd.f32 %v1298_v30, %v290_v53  ;;  %v3057_v53 = vld [vmem:[%s3187_s5 + $0x28] sm:$0xff]  ;;  %v3063_v30 = vld [vmem:[%s3187_s5 + $0x10] sm:$0xff] }
 0x68a   :  { %v2102_v9 = vmul.f32 -1.442695, %v1321_v21  ;;  %v3069_v21 = vld [vmem:[%s3187_s5 + $0x18] sm:$0xff] }
 0x68c   :  { %v2196_v22 = vpop.eup %2195  ;;  %2197 = vpow2.f32 %v2102_v9  ;;  %v3075_v9 = vld [vmem:[%s3187_s5] sm:$0xff] }
 0x68d   :  { %v1330_v24 = vadd.f32 1.0, %v2196_v22  ;;  %v3081_v22 = vld [vmem:[%s3187_s5 + $0x8] sm:$0xff] }
 0x68f   :  { %2199 = vrcp.f32 %v1330_v24  ;;  %v1357_v32 = vand.u32 2147483648, %v1330_v24  ;;  %v1355_v34 = vand.u32 2147483647, %v1330_v24  ;;  %vm1351_vm7 = vweird.f32 %v1330_v24 }
 0x691   :  { %v1358_v35 = vor.u32 1.1754944e-38, %v1357_v32  ;;  %vm1356_vm9 = vcmp.eq.f32.partialorder %v1355_v34, 8.507059e+37 }
 0x692   :  { %v2198_v25 = vpop.eup %2197 }
 0x693   :  { %v1329_v1 = vadd.f32 1.0, %v2198_v25 }
 0x695   :  { %v2200_v27 = vpop.eup %2199  ;;  %2201 = vrcp.f32 %v1329_v1  ;;  %v1342_v41 = vand.u32 2147483648, %v1329_v1  ;;  %v1340_v46 = vand.u32 2147483647, %v1329_v1  ;;  %vm1336_vm11 = vweird.f32 %v1329_v1 }
 0x696   :  { %v1347_v28 = vmul.f32 %v2200_v27, %v1330_v24  ;;  %vm1352_vm6 = vweird.f32 %v2200_v27  ;;  %v335_v24 = vadd.f32 %v2826_v14, %v2839_v31 }
 0x697   :  { %vm1353_vm8 = vmor %vm1351_vm7, %vm1352_vm6  ;;  %v1343_v43 = vor.u32 1.1754944e-38, %v1342_v41  ;;  %vm1341_vm13 = vcmp.eq.f32.partialorder %v1340_v46, 8.507059e+37 }
 0x698   :  { %v1348_v6 = vsub.f32 1.0, %v1347_v28 }
 0x69a   :  { %v1349_v57 = vmul.f32 %v2200_v27, %v1348_v6 }
 0x69b   :  { %v2202_v37 = vpop.eup %2201 }
 0x69c   :  { %v1332_v8 = vmul.f32 %v2202_v37, %v1329_v1  ;;  %v1350_v51 = vadd.f32 %v2200_v27, %v1349_v57  ;;  %vm1337_vm10 = vweird.f32 %v2202_v37 }
 0x69d   :  { %vm1338_vm12 = vmor %vm1336_vm11, %vm1337_vm10 }
 0x69e   :  { %v1333_v38 = vsub.f32 1.0, %v1332_v8  ;;  %v1354_v33 = vsel %vm1353_vm8, %v2200_v27, %v1350_v51 }
 0x69f   :  { %v1359_v54 = vsel %vm1356_vm9, %v1358_v35, %v1354_v33 }
 0x6a0   :  { %v1334_v36 = vmul.f32 %v2202_v37, %v1333_v38  ;;  %v1361_v49 = vmul.f32 2.0, %v1359_v54 }
 0x6a2   :  { %v1335_v40 = vadd.f32 %v2202_v37, %v1334_v36  ;;  %v2104_v47 = vadd.f32 -1.0, %v1361_v49 }
 0x6a4   :  { %v1339_v48 = vsel %vm1338_vm12, %v2202_v37, %v1335_v40 }
 0x6a5   :  { %v1344_v56 = vsel %vm1341_vm13, %v1343_v43, %v1339_v48 }
 0x6a6   :  { %v1364_v3 = vmul.f32 %v2104_v47, %v1344_v56  ;;  %v1363_v44 = vmul.f32 %v1344_v56, %v2957_v50  ;;  %v3051_v50 = vld [vmem:[%s3187_s5 + $0x20] sm:$0xff] }
 0x6a8   :  { %1366 = vrot.lane.b32.xlu1 %v1364_v3, %s2288_s1 }
 0x71a   :  { %v1367_v63 = vpop.permute.xlu1 %1366 }
 0x71b   :  { %v3033_v7 = vadd.f32 %v1367_v63, %v1363_v44 }
 0x71d   :  { %2203 = vtanh.f32 %v3033_v7 }
 0x723   :  { %v2204_v60 = vpop.eup %2203 }
 0x724   :  { %v1371_v58 = vmul.f32 %v2204_v60, %v1359_v54 }
 0x726   :  { %2105 = vmatmul.msk.f32.vlgmr.msrb.gmra.mxu1 %vm807_vm3, %v1371_v58  ;;  %2106 = vmatmul.msk.f32.vlgmr.msrb.gmra.mxu2 %vm807_vm3, %v1371_v58 }
 0x727   :  { %1759 = vmatpush.msrb.mxu1 %v2965_v2  ;;  %1779 = vmatpush.msrb.mxu2 %v2971_v42 }
 0x729   :  { %1760 = vmatpush.msrb.mxu1 %v2977_v5  ;;  %1780 = vmatpush.msrb.mxu2 %v2983_v10 }
 0x72b   :  { %1761 = vmatpush.msrb.mxu1 %v2989_v11  ;;  %1781 = vmatpush.msrb.mxu2 %v2995_v12 }
 0x72d   :  { %1762 = vmatpush.msrb.mxu1 %v3001_v15  ;;  %1782 = vmatpush.msrb.mxu2 %v3007_v16 }
 0x72f   :  { %1763 = vmatpush.msrb.mxu1 %v3013_v18  ;;  %1783 = vmatpush.msrb.mxu2 %v3019_v19 }
 0x731   :  { %1764 = vmatpush.msrb.mxu1 %v3051_v50  ;;  %1784 = vmatpush.msrb.mxu2 %v3057_v53 }
 0x733   :  { %1765 = vmatpush.msrb.mxu1 %v3063_v30  ;;  %1785 = vmatpush.msrb.mxu2 %v3069_v21 }
 0x735   :  { %1766 = vmatpush.msrb.mxu1 %v3075_v9  ;;  %1786 = vmatpush.msrb.mxu2 %v3081_v22 }
 0x7a3   :  { %v1392_v25 = vpop.f32.mrf.mxu1 }
 0x7a4   :  { %v1415_v1 = vadd.f32 %v1392_v25, %v335_v24 }
 0x7a6   :  { %v2107_v27 = vmul.f32 -1.442695, %v1415_v1 }
 0x7a8   :  { %2205 = vpow2.f32 %v2107_v27 }
 0x7a9   :  { %v1412_v28 = vpop.f32.mrf.mxu2 }
 0x7aa   :  { %v1416_v6 = vadd.f32 %v1412_v28, %v2790_v55 }
 0x7ac   :  { %v2108_v32 = vmul.f32 -1.442695, %v1416_v6 }
 0x7ae   :  { %v2206_v57 = vpop.eup %2205  ;;  %2207 = vpow2.f32 %v2108_v32 }
 0x7af   :  { %v1423_v34 = vadd.f32 1.0, %v2206_v57 }
 0x7b1   :  { %2209 = vrcp.f32 %v1423_v34  ;;  %v1436_v43 = vand.u32 2147483648, %v1423_v34  ;;  %vm1430_vm2 = vweird.f32 %v1423_v34  ;;  %v1434_v47 = vand.u32 2147483647, %v1423_v34 }
 0x7b3   :  { %v1437_v60 = vor.u32 1.1754944e-38, %v1436_v43  ;;  %vm1435_vm6 = vcmp.eq.f32.partialorder %v1434_v47, 8.507059e+37 }
 0x7b4   :  { %v2208_v37 = vpop.eup %2207 }
 0x7b5   :  { %v1424_v8 = vadd.f32 1.0, %v2208_v37 }
 0x7b7   :  { %v2210_v51 = vpop.eup %2209  ;;  %2211 = vrcp.f32 %v1424_v8  ;;  %v1451_v36 = vand.u32 2147483648, %v1424_v8  ;;  %v1449_v49 = vand.u32 2147483647, %v1424_v8  ;;  %vm1445_vm0 = vweird.f32 %v1424_v8 }
 0x7b8   :  { %v1426_v35 = vmul.f32 %v2210_v51, %v1423_v34  ;;  %vm1431_vm15 = vweird.f32 %v2210_v51 }
 0x7b9   :  { %v1452_v48 = vor.u32 1.1754944e-38, %v1451_v36  ;;  %vm1450_vm4 = vcmp.eq.f32.partialorder %v1449_v49, 8.507059e+37  ;;  %vm1432_vm5 = vmor %vm1430_vm2, %vm1431_vm15 }
 0x7ba   :  { %v1427_v38 = vsub.f32 1.0, %v1426_v35 }
 0x7bc   :  { %v1428_v54 = vmul.f32 %v2210_v51, %v1427_v38 }
 0x7bd   :  { %v2212_v33 = vpop.eup %2211 }
 0x7be   :  { %v1441_v14 = vmul.f32 %v2212_v33, %v1424_v8  ;;  %vm1446_vm14 = vweird.f32 %v2212_v33  ;;  %v1429_v55 = vadd.f32 %v2210_v51, %v1428_v54 }
 0x7bf   :  { %vm1447_vm1 = vmor %vm1445_vm0, %vm1446_vm14 }
 0x7c0   :  { %v1442_v41 = vsub.f32 1.0, %v1441_v14  ;;  %v1433_v44 = vsel %vm1432_vm5, %v2210_v51, %v1429_v55 }
 0x7c1   :  { %v1438_v24 = vsel %vm1435_vm6, %v1437_v60, %v1433_v44 }
 0x7c2   :  { %v1443_v46 = vmul.f32 %v2212_v33, %v1442_v41  ;;  %v1457_v1 = vmul.f32 %v1438_v24, %v3033_v7 }
 0x7c4   :  { %v1444_v40 = vadd.f32 %v2212_v33, %v1443_v46 }
 0x7c6   :  { %v1448_v56 = vsel %vm1447_vm1, %v2212_v33, %v1444_v40 }
 0x7c7   :  { %v1453_v3 = vsel %vm1450_vm4, %v1452_v48, %v1448_v56 }
 0x7c8   :  { %v1455_v63 = vmul.f32 2.0, %v1453_v3 }
 0x7ca   :  { %v2109_v58 = vadd.f32 -1.0, %v1455_v63 }
 0x7cc   :  { %v1458_v25 = vmul.f32 %v2109_v58, %v1438_v24 }
 0x7ce   :  { %1460 = vrot.lane.b32.xlu2 %v1458_v25, %s2288_s1 }
 0x828   :  { %v1461_v27 = vpop.permute.xlu2 %1460 }
 0x829   :  { %v3089_v28 = vadd.f32 %v1461_v27, %v1457_v1 }
 0x82b   :  { %2213 = vtanh.f32 %v3089_v28 }
 0x831   :  { %v2214_v6 = vpop.eup %2213 }
 0x832   :  { %v1465_v32 = vmul.f32 %v2214_v6, %v1453_v3  ;;  %v425_v3 = vadd.f32 %v2830_v20, %v2839_v31 }
 0x834   :  { %2110 = vmatmul.msk.f32.vlgmr.msra.gmra.mxu3 %vm807_vm3, %v1465_v32  ;;  %2111 = vmatmul.msk.f32.vlgmr.msrb.gmra.mxu0 %vm807_vm3, %v1465_v32 }
 0x835   :  { %1853 = vmatpush.msra.mxu3 %v2965_v2  ;;  %1873 = vmatpush.msrb.mxu0 %v2971_v42 }
 0x837   :  { %1854 = vmatpush.msra.mxu3 %v2977_v5  ;;  %1874 = vmatpush.msrb.mxu0 %v2983_v10  ;;  %v380_v10 = vadd.f32 %v2824_v13, %v2839_v31 }
 0x839   :  { %1855 = vmatpush.msra.mxu3 %v2989_v11  ;;  %1875 = vmatpush.msrb.mxu0 %v2995_v12 }
 0x83b   :  { %1856 = vmatpush.msra.mxu3 %v3001_v15  ;;  %1876 = vmatpush.msrb.mxu0 %v3007_v16 }
 0x83d   :  { %1857 = vmatpush.msra.mxu3 %v3013_v18  ;;  %1877 = vmatpush.msrb.mxu0 %v3019_v19 }
 0x83f   :  { %1858 = vmatpush.msra.mxu3 %v3051_v50  ;;  %1878 = vmatpush.msrb.mxu0 %v3057_v53 }
 0x841   :  { %1859 = vmatpush.msra.mxu3 %v3063_v30  ;;  %1879 = vmatpush.msrb.mxu0 %v3069_v21 }
 0x843   :  { %1860 = vmatpush.msra.mxu3 %v3075_v9  ;;  %1880 = vmatpush.msrb.mxu0 %v3081_v22 }
 0x8b1   :  { %v1506_v2 = vpop.f32.mrf.mxu0 }
 0x8b2   :  { %v1510_v42 = vadd.f32 %v1506_v2, %v2809_v61 }
 0x8b4   :  { %v2113_v5 = vmul.f32 -1.442695, %v1510_v42 }
 0x8b6   :  { %2215 = vpow2.f32 %v2113_v5 }
 0x8b7   :  { %v1486_v11 = vpop.f32.mrf.mxu3 }
 0x8b8   :  { %v1509_v12 = vadd.f32 %v1486_v11, %v380_v10 }
 0x8ba   :  { %v2112_v15 = vmul.f32 -1.442695, %v1509_v12 }
 0x8bc   :  { %v2216_v16 = vpop.eup %2215  ;;  %2217 = vpow2.f32 %v2112_v15 }
 0x8bd   :  { %v1518_v18 = vadd.f32 1.0, %v2216_v16 }
 0x8bf   :  { %2219 = vrcp.f32 %v1518_v18  ;;  %v1545_v21 = vand.u32 2147483648, %v1518_v18  ;;  %v1543_v9 = vand.u32 2147483647, %v1518_v18  ;;  %vm1539_vm8 = vweird.f32 %v1518_v18 }
 0x8c1   :  { %v1546_v34 = vor.u32 1.1754944e-38, %v1545_v21  ;;  %vm1544_vm10 = vcmp.eq.f32.partialorder %v1543_v9, 8.507059e+37 }
 0x8c2   :  { %v2218_v19 = vpop.eup %2217 }
 0x8c3   :  { %v1517_v7 = vadd.f32 1.0, %v2218_v19 }
 0x8c5   :  { %v2220_v50 = vpop.eup %2219  ;;  %2221 = vrcp.f32 %v1517_v7  ;;  %v1530_v51 = vand.u32 2147483648, %v1517_v7  ;;  %v1528_v33 = vand.u32 2147483647, %v1517_v7  ;;  %vm1524_vm12 = vweird.f32 %v1517_v7 }
 0x8c6   :  { %v1535_v53 = vmul.f32 %v2220_v50, %v1518_v18  ;;  %vm1540_vm7 = vweird.f32 %v2220_v50 }
 0x8c7   :  { %vm1541_vm9 = vmor %vm1539_vm8, %vm1540_vm7  ;;  %v1531_v54 = vor.u32 1.1754944e-38, %v1530_v51  ;;  %vm1529_vm14 = vcmp.eq.f32.partialorder %v1528_v33, 8.507059e+37 }
 0x8c8   :  { %v1536_v30 = vsub.f32 1.0, %v1535_v53 }
 0x8ca   :  { %v1537_v61 = vmul.f32 %v2220_v50, %v1536_v30 }
 0x8cb   :  { %v2222_v22 = vpop.eup %2221 }
 0x8cc   :  { %v1520_v13 = vmul.f32 %v2222_v22, %v1517_v7  ;;  %v1538_v57 = vadd.f32 %v2220_v50, %v1537_v61  ;;  %vm1525_vm11 = vweird.f32 %v2222_v22 }
 0x8cd   :  { %vm1526_vm13 = vmor %vm1524_vm12, %vm1525_vm11 }
 0x8ce   :  { %v1521_v37 = vsub.f32 1.0, %v1520_v13  ;;  %v1542_v8 = vsel %vm1541_vm9, %v2220_v50, %v1538_v57 }
 0x8cf   :  { %v1547_v35 = vsel %vm1544_vm10, %v1546_v34, %v1542_v8 }
 0x8d0   :  { %v1522_v38 = vmul.f32 %v2222_v22, %v1521_v37  ;;  %v1549_v14 = vmul.f32 2.0, %v1547_v35 }
 0x8d2   :  { %v1523_v41 = vadd.f32 %v2222_v22, %v1522_v38  ;;  %v2114_v46 = vadd.f32 -1.0, %v1549_v14 }
 0x8d4   :  { %v1527_v36 = vsel %vm1526_vm13, %v2222_v22, %v1523_v41  ;;  %v470_v41 = vadd.f32 %v2828_v17, %v2839_v31 }
 0x8d5   :  { %v1532_v49 = vsel %vm1529_vm14, %v1531_v54, %v1527_v36 }
 0x8d6   :  { %v1552_v55 = vmul.f32 %v2114_v46, %v1532_v49  ;;  %v1551_v40 = vmul.f32 %v1532_v49, %v3089_v28 }
 0x8d8   :  { %1554 = vrot.lane.b32.xlu0 %v1552_v55, %s2288_s1 }
 0x94a   :  { %v1555_v43 = vpop.permute.xlu0 %1554 }
 0x94b   :  { %v1557_v48 = vadd.f32 %v1555_v43, %v1551_v40 }
 0x94d   :  { %2223 = vtanh.f32 %v1557_v48 }
 0x953   :  { %v2224_v47 = vpop.eup %2223 }
 0x954   :  { %v1559_v56 = vmul.f32 %v2224_v47, %v1547_v35 }
 0x956   :  { %2115 = vmatmul.msk.f32.vlgmr.msra.gmra.mxu1 %vm807_vm3, %v1559_v56  ;;  %2116 = vmatmul.msk.f32.vlgmr.msra.gmra.mxu2 %vm807_vm3, %v1559_v56 }
 0x9d3   :  { %v1580_v44 = vpop.f32.mrf.mxu1 }
 0x9d4   :  { %v1603_v63 = vadd.f32 %v1580_v44, %v425_v3 }
 0x9d6   :  { %v2117_v60 = vmul.f32 -1.442695, %v1603_v63 }
 0x9d8   :  { %2225 = vpow2.f32 %v2117_v60 }
 0x9d9   :  { %v1600_v58 = vpop.f32.mrf.mxu2 }
 0x9da   :  { %v1604_v24 = vadd.f32 %v1600_v58, %v2805_v59 }
 0x9dc   :  { %v2118_v25 = vmul.f32 -1.442695, %v1604_v24 }
 0x9de   :  { %v2226_v1 = vpop.eup %2225  ;;  %2227 = vpow2.f32 %v2118_v25 }
 0x9df   :  { %v1611_v27 = vadd.f32 1.0, %v2226_v1 }
 0x9e1   :  { %2229 = vrcp.f32 %v1611_v27  ;;  %v1624_v19 = vand.u32 2147483648, %v1611_v27  ;;  %vm1618_vm4 = vweird.f32 %v1611_v27  ;;  %v1622_v50 = vand.u32 2147483647, %v1611_v27 }
 0x9e3   :  { %v1625_v9 = vor.u32 1.1754944e-38, %v1624_v19  ;;  %vm1623_vm7 = vcmp.eq.f32.partialorder %v1622_v50, 8.507059e+37  ;;  %v515_v19 = vadd.f32 %v2836_v29, %v2839_v31 }
 0x9e4   :  { %v2228_v28 = vpop.eup %2227 }
 0x9e5   :  { %v1612_v6 = vadd.f32 1.0, %v2228_v28 }
 0x9e7   :  { %v2230_v32 = vpop.eup %2229  ;;  %2231 = vrcp.f32 %v1612_v6  ;;  %v1639_v12 = vand.u32 2147483648, %v1612_v6  ;;  %v1637_v16 = vand.u32 2147483647, %v1612_v6  ;;  %vm1633_vm1 = vweird.f32 %v1612_v6 }
 0x9e8   :  { %v1614_v2 = vmul.f32 %v2230_v32, %v1611_v27  ;;  %vm1619_vm0 = vweird.f32 %v2230_v32 }
 0x9e9   :  { %v1640_v7 = vor.u32 1.1754944e-38, %v1639_v12  ;;  %vm1638_vm5 = vcmp.eq.f32.partialorder %v1637_v16, 8.507059e+37  ;;  %vm1620_vm6 = vmor %vm1618_vm4, %vm1619_vm0 }
 0x9ea   :  { %v1615_v42 = vsub.f32 1.0, %v1614_v2 }
 0x9ec   :  { %v1616_v11 = vmul.f32 %v2230_v32, %v1615_v42 }
 0x9ed   :  { %v2232_v5 = vpop.eup %2231 }
 0x9ee   :  { %v1629_v20 = vmul.f32 %v2232_v5, %v1612_v6  ;;  %vm1634_vm15 = vweird.f32 %v2232_v5  ;;  %v1617_v59 = vadd.f32 %v2230_v32, %v1616_v11 }
 0x9ef   :  { %vm1635_vm2 = vmor %vm1633_vm1, %vm1634_vm15 }
 0x9f0   :  { %v1630_v10 = vsub.f32 1.0, %v1629_v20  ;;  %v1621_v21 = vsel %vm1620_vm6, %v2230_v32, %v1617_v59 }
 0x9f1   :  { %v1626_v13 = vsel %vm1623_vm7, %v1625_v9, %v1621_v21 }
 0x9f2   :  { %v1631_v15 = vmul.f32 %v2232_v5, %v1630_v10  ;;  %v1645_v34 = vmul.f32 %v1626_v13, %v1557_v48 }
 0x9f4   :  { %v1632_v18 = vadd.f32 %v2232_v5, %v1631_v15 }
 0x9f6   :  { %v1636_v53 = vsel %vm1635_vm2, %v2232_v5, %v1632_v18 }
 0x9f7   :  { %v1641_v30 = vsel %vm1638_vm5, %v1640_v7, %v1636_v53 }
 0x9f8   :  { %v1643_v61 = vmul.f32 2.0, %v1641_v30 }
 0x9fa   :  { %v2119_v22 = vadd.f32 -1.0, %v1643_v61 }
 0x9fc   :  { %v1646_v57 = vmul.f32 %v2119_v22, %v1626_v13 }
 0x9fe   :  { %1648 = vrot.lane.b32.xlu1 %v1646_v57, %s2288_s1 }
 0xa70   :  { %v1649_v37 = vpop.permute.xlu1 %1648 }
 0xa71   :  { %v1651_v8 = vadd.f32 %v1649_v37, %v1645_v34 }
 0xa73   :  { %2233 = vtanh.f32 %v1651_v8 }
 0xa79   :  { %v2234_v51 = vpop.eup %2233 }
 0xa7a   :  { %v1653_v35 = vmul.f32 %v2234_v51, %v1641_v30  ;;  %v535_v30 = vadd.f32 %v2832_v23, %v2745_v45 }
 0xa7c   :  { %2120 = vmatmul.msk.f32.vlgmr.msrb.gmra.mxu3 %vm807_vm3, %v1653_v35  ;;  %2121 = vmatmul.msk.f32.vlgmr.msra.gmra.mxu0 %vm807_vm3, %v1653_v35 }
 0xaf9   :  { %v1694_v38 = vpop.f32.mrf.mxu0 }
 0xafa   :  { %v1698_v33 = vadd.f32 %v1694_v38, %v2812_v0 }
 0xafc   :  { %v2123_v14 = vmul.f32 -1.442695, %v1698_v33 }
 0xafe   :  { %2235 = vpow2.f32 %v2123_v14 }
 0xaff   :  { %v1674_v54 = vpop.f32.mrf.mxu3 }
 0xb00   :  { %v1697_v36 = vadd.f32 %v1674_v54, %v470_v41 }
 0xb02   :  { %v2122_v46 = vmul.f32 -1.442695, %v1697_v36 }
 0xb04   :  { %v2236_v49 = vpop.eup %2235  ;;  %2237 = vpow2.f32 %v2122_v46 }
 0xb05   :  { %v1706_v55 = vadd.f32 1.0, %v2236_v49 }
 0xb07   :  { %2239 = vrcp.f32 %v1706_v55  ;;  %v1733_v3 = vand.u32 2147483648, %v1706_v55  ;;  %v1731_v44 = vand.u32 2147483647, %v1706_v55  ;;  %vm1727_vm9 = vweird.f32 %v1706_v55 }
 0xb09   :  { %v1734_v58 = vor.u32 1.1754944e-38, %v1733_v3  ;;  %vm1732_vm11 = vcmp.eq.f32.partialorder %v1731_v44, 8.507059e+37 }
 0xb0a   :  { %v2238_v40 = vpop.eup %2237 }
 0xb0b   :  { %v1705_v43 = vadd.f32 1.0, %v2238_v40 }
 0xb0d   :  { %v2240_v48 = vpop.eup %2239  ;;  %2241 = vrcp.f32 %v1705_v43  ;;  %v1718_v1 = vand.u32 2147483648, %v1705_v43  ;;  %v1716_v6 = vand.u32 2147483647, %v1705_v43  ;;  %vm1712_vm13 = vweird.f32 %v1705_v43 }
 0xb0e   :  { %v1723_v47 = vmul.f32 %v2240_v48, %v1706_v55  ;;  %vm1728_vm8 = vweird.f32 %v2240_v48 }
 0xb0f   :  { %vm1729_vm10 = vmor %vm1727_vm9, %vm1728_vm8  ;;  %v1719_v42 = vor.u32 1.1754944e-38, %v1718_v1  ;;  %vm1717_vm15 = vcmp.eq.f32.partialorder %v1716_v6, 8.507059e+37  ;;  %v560_v6 = vadd.f32 %v2834_v26, %v2839_v31 }
 0xb10   :  { %v1724_v56 = vsub.f32 1.0, %v1723_v47 }
 0xb12   :  { %v1725_v0 = vmul.f32 %v2240_v48, %v1724_v56 }
 0xb13   :  { %v2242_v63 = vpop.eup %2241 }
 0xb14   :  { %v1708_v17 = vmul.f32 %v2242_v63, %v1705_v43  ;;  %v1726_v60 = vadd.f32 %v2240_v48, %v1725_v0  ;;  %vm1713_vm12 = vweird.f32 %v2242_v63 }
 0xb15   :  { %vm1714_vm14 = vmor %vm1712_vm13, %vm1713_vm12 }
 0xb16   :  { %v1709_v24 = vsub.f32 1.0, %v1708_v17  ;;  %v1730_v25 = vsel %vm1729_vm10, %v2240_v48, %v1726_v60 }
 0xb17   :  { %v1735_v27 = vsel %vm1732_vm11, %v1734_v58, %v1730_v25  ;;  %v580_v25 = vadd.f32 %v2867_v52, %v2745_v45 }
 0xb18   :  { %v1710_v28 = vmul.f32 %v2242_v63, %v1709_v24  ;;  %v1737_v32 = vmul.f32 2.0, %v1735_v27 }
 0xb1a   :  { %v1711_v2 = vadd.f32 %v2242_v63, %v1710_v28  ;;  %v2124_v20 = vadd.f32 -1.0, %v1737_v32 }
 0xb1c   :  { %v1715_v5 = vsel %vm1714_vm14, %v2242_v63, %v1711_v2 }
 0xb1d   :  { %v1720_v10 = vsel %vm1717_vm15, %v1719_v42, %v1715_v5  ;;  %v1943_v42 = vld [vmem:[%s3192_s6 + $0x38] sm:$0xff]  ;;  %v1942_v5 = vld [vmem:[%s3192_s6 + $0x30] sm:$0xff] }
 0xb1e   :  { %v1740_v11 = vmul.f32 %v2124_v20, %v1720_v10  ;;  %v1739_v12 = vmul.f32 %v1720_v10, %v1651_v8  ;;  %1958 = vmatpush.msra.mxu1 %v1943_v42 }
 0xb20   :  { %1742 = vrot.lane.b32.xlu2 %v1740_v11, %s2288_s1  ;;  %1959 = vmatpush.msra.mxu1 %v1942_v5 }
 0xb7a   :  { %v1743_v15 = vpop.permute.xlu2 %1742 }
 0xb7b   :  { %v1745_v16 = vadd.f32 %v1743_v15, %v1739_v12 }
 0xb7d   :  { %2243 = vtanh.f32 %v1745_v16 }
 0xb83   :  { %v2244_v59 = vpop.eup %2243 }
 0xb84   :  { %v1747_v18 = vmul.f32 %v2244_v59, %v1735_v27 }
 0xb86   :  { %2125 = vmatmul.msk.f32.vlgmr.msrb.gmra.mxu1 %vm807_vm3, %v1747_v18  ;;  %2126 = vmatmul.msk.f32.vlgmr.msrb.gmra.mxu2 %vm807_vm3, %v1747_v18 }
 0xc03   :  { %v1768_v7 = vpop.f32.mrf.mxu1 }
 0xc04   :  { %v1791_v50 = vadd.f32 %v1768_v7, %v515_v19 }
 0xc06   :  { %v2127_v53 = vmul.f32 -1.442695, %v1791_v50 }
 0xc08   :  { %2245 = vpow2.f32 %v2127_v53 }
 0xc09   :  { %v1788_v21 = vpop.f32.mrf.mxu2 }
 0xc0a   :  { %v1792_v61 = vadd.f32 %v1788_v21, %v535_v30 }
 0xc0c   :  { %v2128_v9 = vmul.f32 -1.442695, %v1792_v61 }
 0xc0e   :  { %v2246_v22 = vpop.eup %2245  ;;  %2247 = vpow2.f32 %v2128_v9 }
 0xc0f   :  { %v1799_v13 = vadd.f32 1.0, %v2246_v22 }
 0xc11   :  { %2249 = vrcp.f32 %v1799_v13  ;;  %v1812_v46 = vand.u32 2147483648, %v1799_v13  ;;  %vm1806_vm5 = vweird.f32 %v1799_v13  ;;  %v1810_v55 = vand.u32 2147483647, %v1799_v13 }
 0xc13   :  { %v1813_v56 = vor.u32 1.1754944e-38, %v1812_v46  ;;  %vm1811_vm8 = vcmp.eq.f32.partialorder %v1810_v55, 8.507059e+37 }
 0xc14   :  { %v2248_v57 = vpop.eup %2247 }
 0xc15   :  { %v1800_v34 = vadd.f32 1.0, %v2248_v57 }
 0xc17   :  { %v2250_v37 = vpop.eup %2249  ;;  %2251 = vrcp.f32 %v1800_v34  ;;  %v1827_v14 = vand.u32 2147483648, %v1800_v34  ;;  %v1825_v41 = vand.u32 2147483647, %v1800_v34  ;;  %vm1821_vm2 = vweird.f32 %v1800_v34 }
 0xc18   :  { %v1802_v8 = vmul.f32 %v2250_v37, %v1799_v13  ;;  %vm1807_vm1 = vweird.f32 %v2250_v37 }
 0xc19   :  { %v1828_v49 = vor.u32 1.1754944e-38, %v1827_v14  ;;  %vm1826_vm6 = vcmp.eq.f32.partialorder %v1825_v41, 8.507059e+37  ;;  %vm1808_vm7 = vmor %vm1806_vm5, %vm1807_vm1  ;;  %v1938_v14 = vld [vmem:[%s3192_s6 + $0x10] sm:$0xff]  ;;  %v1936_v41 = vld [vmem:[%s3192_s6] sm:$0xff] }
 0xc1a   :  { %v1803_v29 = vsub.f32 1.0, %v1802_v8 }
 0xc1c   :  { %v1804_v33 = vmul.f32 %v2250_v37, %v1803_v29 }
 0xc1d   :  { %v2252_v51 = vpop.eup %2251 }
 0xc1e   :  { %v1817_v35 = vmul.f32 %v2252_v51, %v1800_v34  ;;  %vm1822_vm0 = vweird.f32 %v2252_v51  ;;  %v1805_v54 = vadd.f32 %v2250_v37, %v1804_v33  ;;  %v1939_v33 = vld [vmem:[%s3192_s6 + $0x18] sm:$0xff] }
 0xc1f   :  { %vm1823_vm4 = vmor %vm1821_vm2, %vm1822_vm0  ;;  %vm1999_vm2 = vcmask 7168  }
 0xc20   :  { %v1818_v38 = vsub.f32 1.0, %v1817_v35  ;;  %v1809_v48 = vsel %vm1808_vm7, %v2250_v37, %v1805_v54  ;;  %v1941_v35 = vld [vmem:[%s3192_s6 + $0x28] sm:$0xff] }
 0xc21   :  { %v1814_v0 = vsel %vm1811_vm8, %v1813_v56, %v1809_v48  ;;  %1960 = vmatpush.msra.mxu1 %v1941_v35  ;;  %v2142_v48 = vld [vmem:[%s3192_s6 + $0x40] ss:$0 sm:$0xff] }
 0xc22   :  { %v1819_v23 = vmul.f32 %v2252_v51, %v1818_v38  ;;  %v1833_v63 = vmul.f32 %v1814_v0, %v1745_v16  ;;  %v1940_v38 = vld [vmem:[%s3192_s6 + $0x20] sm:$0xff] }
 0xc23   :  { %1961 = vmatpush.msra.mxu1 %v1940_v38 }
 0xc24   :  { %v1820_v36 = vadd.f32 %v2252_v51, %v1819_v23  ;;  %v1937_v23 = vld [vmem:[%s3192_s6 + $0x8] sm:$0xff] }
 0xc25   :  { %1962 = vmatpush.msra.mxu1 %v1939_v33 }
 0xc26   :  { %v1824_v40 = vsel %vm1823_vm4, %v2252_v51, %v1820_v36 }
 0xc27   :  { %v1829_v43 = vsel %vm1826_vm6, %v1828_v49, %v1824_v40  ;;  %1963 = vmatpush.msra.mxu1 %v1938_v14  ;;  %v769_v40 = vadd.f32 %v2871_v4, %v2842_v39  ;;  %v2144_v39 = vld [vmem:[%s3192_s6 + $0x42] ss:$0 sm:$0xff] }
 0xc28   :  { %v1831_v47 = vmul.f32 2.0, %v1829_v43 }
 0xc29   :  { %1964 = vmatpush.msra.mxu1 %v1937_v23 }
 0xc2a   :  { %v2129_v3 = vadd.f32 -1.0, %v1831_v47 }
 0xc2b   :  { %1965 = vmatpush.msra.mxu1 %v1936_v41 }
 0xc2c   :  { %v1834_v44 = vmul.f32 %v2129_v3, %v1814_v0  ;;  %v2143_v0 = vld [vmem:[%s3192_s6 + $0x41] ss:$0 sm:$0xff] }
 0xc2e   :  { %1836 = vrot.lane.b32.xlu0 %v1834_v44, %s2288_s1 }
 0xca0   :  { %v1837_v17 = vpop.permute.xlu0 %1836 }
 0xca1   :  { %v3134_v60 = vadd.f32 %v1837_v17, %v1833_v63 }
 0xca3   :  { %2253 = vtanh.f32 %v3134_v60 }
 0xca9   :  { %v2254_v58 = vpop.eup %2253 }
 0xcaa   :  { %v1841_v24 = vmul.f32 %v2254_v58, %v1829_v43  ;;  %v789_v43 = vadd.f32 %v2869_v62, %v769_v40 }
 0xcac   :  { %2130 = vmatmul.msk.f32.vlgmr.msra.gmra.mxu3 %vm807_vm3, %v1841_v24  ;;  %2131 = vmatmul.msk.f32.vlgmr.msrb.gmra.mxu0 %vm807_vm3, %v1841_v24 }
 0xd29   :  { %v1882_v1 = vpop.f32.mrf.mxu0 }
 0xd2a   :  { %v1886_v27 = vadd.f32 %v1882_v1, %v580_v25 }
 0xd2c   :  { %v2133_v28 = vmul.f32 -1.442695, %v1886_v27 }
 0xd2e   :  { %2255 = vpow2.f32 %v2133_v28 }
 0xd2f   :  { %v1862_v32 = vpop.f32.mrf.mxu3 }
 0xd30   :  { %v1885_v2 = vadd.f32 %v1862_v32, %v560_v6 }
 0xd32   :  { %v2132_v20 = vmul.f32 -1.442695, %v1885_v2 }
 0xd34   :  { %v2256_v45 = vpop.eup %2255  ;;  %2257 = vpow2.f32 %v2132_v20 }
 0xd35   :  { %v1894_v52 = vadd.f32 1.0, %v2256_v45 }
 0xd37   :  { %2259 = vrcp.f32 %v1894_v52  ;;  %v1921_v15 = vand.u32 2147483648, %v1894_v52  ;;  %v1919_v59 = vand.u32 2147483647, %v1894_v52  ;;  %vm1915_vm10 = vweird.f32 %v1894_v52 }
 0xd39   :  { %v1922_v50 = vor.u32 1.1754944e-38, %v1921_v15  ;;  %vm1920_vm12 = vcmp.eq.f32.partialorder %v1919_v59, 8.507059e+37 }
 0xd3a   :  { %v2258_v10 = vpop.eup %2257 }
 0xd3b   :  { %v1893_v26 = vadd.f32 1.0, %v2258_v10 }
 0xd3d   :  { %v2260_v31 = vpop.eup %2259  ;;  %2261 = vrcp.f32 %v1893_v26  ;;  %v1906_v21 = vand.u32 2147483648, %v1893_v26  ;;  %v1904_v22 = vand.u32 2147483647, %v1893_v26  ;;  %vm1900_vm14 = vweird.f32 %v1893_v26 }
 0xd3e   :  { %v1911_v11 = vmul.f32 %v2260_v31, %v1894_v52  ;;  %vm1916_vm9 = vweird.f32 %v2260_v31 }
 0xd3f   :  { %vm1917_vm11 = vmor %vm1915_vm10, %vm1916_vm9  ;;  %v1907_v34 = vor.u32 1.1754944e-38, %v1906_v21  ;;  %vm1905_vm0 = vcmp.eq.f32.partialorder %v1904_v22, 8.507059e+37 }
 0xd40   :  { %v1912_v12 = vsub.f32 1.0, %v1911_v11 }
 0xd42   :  { %v1913_v16 = vmul.f32 %v2260_v31, %v1912_v12 }
 0xd43   :  { %v2262_v18 = vpop.eup %2261 }
 0xd44   :  { %v1896_v19 = vmul.f32 %v2262_v18, %v1893_v26  ;;  %v1914_v7 = vadd.f32 %v2260_v31, %v1913_v16  ;;  %vm1901_vm13 = vweird.f32 %v2262_v18 }
 0xd45   :  { %vm1902_vm15 = vmor %vm1900_vm14, %vm1901_vm13 }
 0xd46   :  { %v1897_v53 = vsub.f32 1.0, %v1896_v19  ;;  %v1918_v30 = vsel %vm1917_vm11, %v2260_v31, %v1914_v7 }
 0xd47   :  { %v1923_v61 = vsel %vm1920_vm12, %v1922_v50, %v1918_v30 }
 0xd48   :  { %v1898_v9 = vmul.f32 %v2262_v18, %v1897_v53  ;;  %v1925_v13 = vmul.f32 2.0, %v1923_v61 }
 0xd4a   :  { %v1899_v57 = vadd.f32 %v2262_v18, %v1898_v9  ;;  %v2134_v8 = vadd.f32 -1.0, %v1925_v13 }
 0xd4c   :  { %v1903_v37 = vsel %vm1902_vm15, %v2262_v18, %v1899_v57 }
 0xd4d   :  { %v1908_v29 = vsel %vm1905_vm0, %v1907_v34, %v1903_v37 }
 0xd4e   :  { %v1928_v51 = vmul.f32 %v2134_v8, %v1908_v29  ;;  %v1927_v54 = vmul.f32 %v1908_v29, %v3134_v60 }
 0xd50   :  { %1930 = vrot.lane.b32.xlu1 %v1928_v51, %s2288_s1 }
 0xdc2   :  { %v1931_v36 = vpop.permute.xlu1 %1930 }
 0xdc3   :  { %v1933_v46 = vadd.f32 %v1931_v36, %v1927_v54 }
 0xdc5   :  { %2263 = vtanh.f32 %v1933_v46 }
 0xdcb   :  { %v2264_v49 = vpop.eup %2263 }
 0xdcc   :  { %v1935_v55 = vmul.f32 %v2264_v49, %v1923_v61 }
 0xdce   :  { %2135 = vmatmul.msk.f32.vlgmr.msra.gmra.mxu1 %vm807_vm3, %v1935_v55 }
 0xe4b   :  { %v1967_v47 = vpop.f32.mrf.mxu1 }
 0xe4c   :  { %v1968_v56 = vadd.f32 %v1967_v47, %v789_v43 }
 0xe4e   :  { %v1971_v3 = vadd.f32 %v2142_v48, %v1968_v56 }
 0xe50   :  { %v1972_v44 = vmax.f32 %v1971_v3, 0.0 }
 0xe52   :  { %v1974_v63 = vmul.f32 %v2143_v0, %v1972_v44 }
 0xe54   :  { %v1975_v17 = vsel %vm807_vm3, %v1974_v63, 0.0 }
 0xe55   :  { %1976 = vadd.xlane.f32.xlu2 %v1975_v17 }
 0xec8   :  { %v1977_v62 = vpop.xlane.xlu2 %1976 }
 0xec9   :  { %v1979_v4 = vadd.f32 %v2144_v39, %v1977_v62 }
 0xecb   :  { %v2136_v60 = vmul.f32 -1.442695, %v1979_v4 }
 0xecd   :  { %2265 = vpow2.f32 %v2136_v60 }
 0xed3   :  { %v2266_v58 = vpop.eup %2265 }
 0xed4   :  { %v1983_v24 = vadd.f32 1.0, %v2266_v58 }
 0xed6   :  { %2267 = vrcp.f32 %v1983_v24  ;;  %v1995_v28 = vand.u32 2147483648, %v1983_v24  ;;  %v1993_v32 = vand.u32 2147483647, %v1983_v24  ;;  %vm1989_vm3 = vweird.f32 %v1983_v24 }
 0xed8   :  { %v1996_v42 = vor.u32 1.1754944e-38, %v1995_v28  ;;  %vm1994_vm5 = vcmp.eq.f32.partialorder %v1993_v32, 8.507059e+37 }
 0xedc   :  { %v2268_v25 = vpop.eup %2267 }
 0xedd   :  { %v1985_v1 = vmul.f32 %v2268_v25, %v1983_v24  ;;  %vm1990_vm1 = vweird.f32 %v2268_v25 }
 0xede   :  { %vm1991_vm4 = vmor %vm1989_vm3, %vm1990_vm1 }
 0xedf   :  { %v1986_v27 = vsub.f32 1.0, %v1985_v1 }
 0xee1   :  { %v1987_v6 = vmul.f32 %v2268_v25, %v1986_v27 }
 0xee3   :  { %v1988_v2 = vadd.f32 %v2268_v25, %v1987_v6 }
 0xee5   :  { %v1992_v5 = vsel %vm1991_vm4, %v2268_v25, %v1988_v2 }
 0xee6   :  { %v1997_v20 = vsel %vm1994_vm5, %v1996_v42, %v1992_v5 }
 0xee7   :  { %2000 = vst.msk [vmem:[%s3193_s7] sm:$0xff] %vm1999_vm2, %v1997_v20 }

</bundles_post_ra>
